<compile_context>
chip_gen: v7x
topology: tpu7x:2x2x1
jax: 0.10.0
libtpu: 0.0.40
codegen_flags: <defaults>
</compile_context>

<pallas_src>
import functools
import math

import jax
import jax.numpy as jnp
from jax.experimental import pallas as pl
from jax.experimental.pallas import tpu as pltpu


# ---------------------------------------------------------------------------
# Feature / hardware probes (guarded so the script runs on any jax version).
# ---------------------------------------------------------------------------
def _pipeline_mode_supported():
    try:
        pl.BlockSpec((8, 128), lambda i: (0, 0), pipeline_mode=pl.Buffered(1))
        return True
    except Exception:
        return False


_PIPELINE_MODE_OK = _pipeline_mode_supported()


def _vmem_capacity_bytes():
    try:
        info = pltpu.get_tpu_info()
        cap = getattr(info, "vmem_capacity_bytes", None)
        if cap:
            return int(cap)
    except Exception:
        pass
    return 64 * 1024 * 1024          # conservative fallback (v7x-class part)


# ---------------------------------------------------------------------------
# Kernel
# ---------------------------------------------------------------------------
def mha_kernel(q_in, k_in, v_in, bias_in,
               w0q_ref, wk_ref, wv_ref, wo_ref, g_ref, b_ref,
               out_ref, attn_ref, *, n_heads, hid_dim, matmul_dtype,
               eps=1e-5):
    Bt, S, D = q_in.shape
    H, hd = n_heads, hid_dim
    HD = H * hd
    rows = Bt * S
    cdt = matmul_dtype

    # ---- projections: fold the batch tile into the matmul M dimension ------
    xq = q_in[...].reshape(rows, D).astype(cdt)
    xk = k_in[...].reshape(rows, D).astype(cdt)
    xv = v_in[...].reshape(rows, D).astype(cdt)

    # Fused residual (fc0) | W_Q: one (rows, D) @ (D, D+HD) MXU push.
    # W_Q already carries the 1/sqrt(hid_dim) scale (folded in the wrapper).
    rq = jnp.dot(xq, w0q_ref[...], preferred_element_type=jnp.float32)
    residual = rq[:, :D]                          # (rows, D)   f32
    q = rq[:, D:]                                 # (rows, HD)  f32, pre-scaled
    k = jnp.dot(xk, wk_ref[...], preferred_element_type=jnp.float32)
    v = jnp.dot(xv, wv_ref[...], preferred_element_type=jnp.float32)

    # ---- head split: one batched relayout per tensor, g = (batch, head) ----
    def split_heads(x_f32):
        x = x_f32.astype(cdt)
        pieces = [x[:, h * hd:(h + 1) * hd].reshape(Bt, S, hd) for h in range(H)]
        return jnp.stack(pieces, axis=1).reshape(Bt * H, S, hd)

    qh = split_heads(q)
    kh = split_heads(k)
    vh = split_heads(v)

    # ---- scores: ONE batched MXU contraction over all heads ----------------
    scores = jnp.einsum('gqd,gkd->gqk', qh, kh,
                        preferred_element_type=jnp.float32)     # (Bt*H, S, S)
    scores = (scores.reshape(Bt, H, S, S)
              + bias_in[...][:, None, :, :].astype(jnp.float32))

    # ---- softmax over keys: max/denominator in f32, exp in compute dtype ---
    m = jnp.max(scores, axis=-1, keepdims=True)
    e = jnp.exp((scores - m).astype(cdt))          # bf16 EUP exp on fast path
    denom = jnp.sum(e.astype(jnp.float32), axis=-1, keepdims=True)
    inv = pl.reciprocal(denom, approx=True)        # EUP slot (off the VALU)
    inv = inv * (2.0 - denom * inv)                # one Newton step -> ~f32
    attn = e * inv.astype(cdt)                     # (Bt, H, S, S), cdt
    attn_ref[...] = attn.astype(attn_ref.dtype)    # exactly what the ctx uses

    # ---- context: ONE batched contraction, then ONE output projection ------
    ctx = jnp.einsum('gqk,gkd->gqd', attn.reshape(Bt * H, S, S), vh,
                     preferred_element_type=jnp.float32).astype(cdt)
    ctx4 = ctx.reshape(Bt, H, S, hd)
    ctx2 = jnp.concatenate([ctx4[:, h].reshape(rows, hd) for h in range(H)],
                           axis=-1)                # (rows, HD)
    out = jnp.dot(ctx2, wo_ref[...], preferred_element_type=jnp.float32)
    out = out + residual

    # ---- LayerNorm over the model dim (f32 math, PyTorch eps = 1e-5) -------
    mu = jnp.mean(out, axis=-1, keepdims=True)
    var = jnp.mean((out - mu) ** 2, axis=-1, keepdims=True)
    y = (out - mu) * jax.lax.rsqrt(var + eps)
    y = y * g_ref[...] + b_ref[...]
    out_ref[...] = y.reshape(Bt, S, D).astype(out_ref.dtype)


# ---------------------------------------------------------------------------
# Tiling heuristics
# ---------------------------------------------------------------------------
def _estimate_vmem_bytes(bt, S, D, H, hd, cbytes, abytes):
    HD = H * hd
    rows = bt * S
    # double-buffered pipeline blocks
    io = (3 * rows * D * 4) * 2                 # f32 activation inputs
    io += (bt * S * S * 2) * 2                  # bf16 additive bias
    io += (rows * D * 4) * 2                    # f32 output
    io += (bt * H * S * S * abytes) * 2         # attn output
    io += (D * (D + HD) + 2 * D * HD + HD * D + 2 * D) * cbytes * 2  # weights
    # live in-kernel intermediates (single copy)
    live = rows * (D + HD) * 4                  # rq
    live += 2 * rows * HD * 4                   # k, v (f32)
    live += 3 * rows * HD * cbytes              # head-split q/k/v
    live += bt * H * S * S * (4 + 2 * cbytes)   # scores + exp + attn
    live += rows * HD * (4 + cbytes)            # ctx
    live += rows * D * 4                        # pre-LN output
    return io + live


def _pick_batch_tile(B, S, D, H, hd, target_rows, vmem_budget, cbytes, abytes):
    best = 1
    for bt in range(1, B + 1):
        if B % bt:
            continue
        if B > 1 and bt > B // 2:
            break         # keep >= 2 grid steps so "parallel" can use both TCs
        if bt * S > max(S, target_rows):
            break
        if _estimate_vmem_bytes(bt, S, D, H, hd, cbytes, abytes) > 0.7 * vmem_budget:
            break
        best = bt
    return best


# ---------------------------------------------------------------------------
# Wrapper
# ---------------------------------------------------------------------------
def multi_head_attention(input_Q, input_K, input_V, attn_mask, params,
                         *, n_heads, hid_dim, matmul_dtype=jnp.bfloat16,
                         attn_dtype=None, batch_tile=None):
    """params = (w_fc0, w_Q, w_K, w_V, w_fc, ln_gamma, ln_beta).

    Weights are (in_features, out_features); attn_mask is boolean
    (True == masked position, as in PyTorch masked_fill_).
    The returned attn is in `attn_dtype` (defaults to matmul_dtype).
    """
    w_fc0, w_Q, w_K, w_V, w_fc, ln_gamma, ln_beta = params
    B, S, D = input_Q.shape
    H = n_heads
    HD = H * hid_dim
    cdt = matmul_dtype
    adt = matmul_dtype if attn_dtype is None else attn_dtype
    cbytes = jnp.dtype(cdt).itemsize
    abytes = jnp.dtype(adt).itemsize

    # Fuse fc0 | (W_Q / sqrt(hid_dim)), pre-cast all weights to compute dtype
    # once (halves weight DMA and removes per-grid-step converts).
    inv_scale = jnp.float32(1.0 / math.sqrt(hid_dim))
    w0q = jnp.concatenate([w_fc0, w_Q * inv_scale], axis=1).astype(cdt)
    wk = w_K.astype(cdt)
    wv = w_V.astype(cdt)
    wo = w_fc.astype(cdt)

    # Additive mask bias precomputed once in the wrapper (bf16 = half the DMA).
    bias = jnp.where(attn_mask, jnp.float32(-1e9),
                     jnp.float32(0.0)).astype(jnp.bfloat16)

    # Generation-aware tiling: bigger tiles / VMEM cap on 128 MiB parts
    # (v5e/v6e), conservative on 64 MiB v7x.
    vmem_cap = _vmem_capacity_bytes()
    if vmem_cap >= 100 * 1024 * 1024:
        vmem_limit = 64 * 1024 * 1024
        target_rows = 512
    else:
        vmem_limit = 40 * 1024 * 1024
        target_rows = 256

    if batch_tile is None:
        bt = _pick_batch_tile(B, S, D, H, hid_dim, target_rows, vmem_limit,
                              cbytes, abytes)
    else:
        bt = batch_tile
    assert B % bt == 0, "batch_tile must divide the batch size"

    kernel = functools.partial(mha_kernel, n_heads=H, hid_dim=hid_dim,
                               matmul_dtype=cdt)

    def _const_spec(shape):
        n = len(shape)

        def idx(b):
            return (0,) * n

        if _PIPELINE_MODE_OK:
            # Grid-invariant block -> single buffer frees VMEM (v7x headroom).
            return pl.BlockSpec(shape, idx, pipeline_mode=pl.Buffered(1))
        return pl.BlockSpec(shape, idx)

    in_specs = [
        pl.BlockSpec((bt, S, D), lambda b: (b, 0, 0)),     # input_Q
        pl.BlockSpec((bt, S, D), lambda b: (b, 0, 0)),     # input_K
        pl.BlockSpec((bt, S, D), lambda b: (b, 0, 0)),     # input_V
        pl.BlockSpec((bt, S, S), lambda b: (b, 0, 0)),     # additive bias bf16
        _const_spec((D, D + HD)),                          # [w_fc0 | w_Q*scale]
        _const_spec((D, HD)),                              # w_K
        _const_spec((D, HD)),                              # w_V
        _const_spec((HD, D)),                              # w_fc
        _const_spec((1, D)),                               # ln gamma
        _const_spec((1, D)),                               # ln beta
    ]
    out_specs = (
        pl.BlockSpec((bt, S, D), lambda b: (b, 0, 0)),
        pl.BlockSpec((bt, H, S, S), lambda b: (b, 0, 0, 0)),
    )
    out_shapes = (
        jax.ShapeDtypeStruct((B, S, D), jnp.float32),
        jax.ShapeDtypeStruct((B, H, S, S), adt),
    )

    flops = 2 * B * (S * D * (D + HD)            # fused residual + Q
                     + 2 * S * D * HD            # K, V projections
                     + 2 * H * S * S * hid_dim   # scores + context
                     + S * HD * D)               # output projection
    transcendentals = B * H * S * S
    bytes_accessed = (3 * B * S * D * 4 + B * S * S * 2
                      + (D * (D + HD) + 2 * D * HD + HD * D) * cbytes + 2 * D * 4
                      + B * S * D * 4 + B * H * S * S * abytes)

    return pl.pallas_call(
        kernel,
        out_shape=out_shapes,
        grid=(B // bt,),
        in_specs=in_specs,
        out_specs=out_specs,
        compiler_params=pltpu.CompilerParams(
            dimension_semantics=("parallel",),
            vmem_limit_bytes=vmem_limit,
        ),
        cost_estimate=pl.CostEstimate(flops=int(flops),
                                      transcendentals=int(transcendentals),
                                      bytes_accessed=int(bytes_accessed)),
    )(input_Q, input_K, input_V, bias, w0q, wk, wv, wo, ln_gamma, ln_beta)


# ---------------------------------------------------------------------------
# Pure-JAX reference (mirrors the PyTorch module) + self-test
# ---------------------------------------------------------------------------
def reference(iq, ik, iv, mask, params, *, n_heads, hid_dim):
    w0, wq, wk, wv, wo, g, b = params
    B, S, D = iq.shape
    H = n_heads
    residual = iq @ w0
    Q = (iq @ wq).reshape(B, S, H, hid_dim).transpose(0, 2, 1, 3)
    K = (ik @ wk).reshape(B, S, H, hid_dim).transpose(0, 2, 1, 3)
    V = (iv @ wv).reshape(B, S, H, hid_dim).transpose(0, 2, 1, 3)
    scores = jnp.einsum("bhqd,bhkd->bhqk", Q, K) / jnp.sqrt(jnp.float32(hid_dim))
    scores = jnp.where(mask[:, None, :, :], -1e9, scores)
    attn = jax.nn.softmax(scores, axis=-1)
    ctx = jnp.einsum("bhqk,bhkd->bhqd", attn, V).transpose(0, 2, 1, 3)
    ctx = ctx.reshape(B, S, H * hid_dim)
    out = ctx @ wo + residual
    mu = out.mean(-1, keepdims=True)
    var = ((out - mu) ** 2).mean(-1, keepdims=True)
    y = (out - mu) / jnp.sqrt(var + 1e-5) * g[0] + b[0]
    return y, attn


if __name__ == "__main__":
    # Small shapes consistent with the module's forward.
    B, S, D = 2, 8, 32          # batch, seq_len, d_model
    H, hid = 4, 8               # n_heads, hid_dim

    key = jax.random.PRNGKey(0)
    keys = jax.random.split(key, 10)

    input_Q = jax.random.normal(keys[0], (B, S, D), jnp.float32)
    input_K = jax.random.normal(keys[1], (B, S, D), jnp.float32)
    input_V = jax.random.normal(keys[2], (B, S, D), jnp.float32)
    # boolean mask: True == masked position (as in masked_fill_)
    attn_mask = jax.random.uniform(keys[3], (B, S, S)) < 0.2

    scale = 0.1
    w_fc0 = scale * jax.random.normal(keys[4], (D, D), jnp.float32)
    w_Q = scale * jax.random.normal(keys[5], (D, H * hid), jnp.float32)
    w_K = scale * jax.random.normal(keys[6], (D, H * hid), jnp.float32)
    w_V = scale * jax.random.normal(keys[7], (D, H * hid), jnp.float32)
    w_fc = scale * jax.random.normal(keys[8], (H * hid, D), jnp.float32)
    ln_gamma = jnp.ones((1, D), jnp.float32)
    ln_beta = jnp.zeros((1, D), jnp.float32)
    params = (w_fc0, w_Q, w_K, w_V, w_fc, ln_gamma, ln_beta)

    ref_out, ref_attn = reference(input_Q, input_K, input_V, attn_mask, params,
                                  n_heads=H, hid_dim=hid)

    # f32 matmul path: tight tolerance against the f32 reference.
    out32, attn32 = multi_head_attention(input_Q, input_K, input_V, attn_mask,
                                         params, n_heads=H, hid_dim=hid,
                                         matmul_dtype=jnp.float32)
    jax.block_until_ready((out32, attn32))
    assert out32.shape == (B, S, D) and attn32.shape == (B, H, S, S)
    assert jnp.allclose(out32, ref_out, rtol=2e-3, atol=2e-3)
    assert jnp.allclose(attn32, ref_attn, rtol=2e-3, atol=2e-3)

    # bf16 MXU path (default fast path on v6e/v7x): looser tolerance.
    out16, attn16 = multi_head_attention(input_Q, input_K, input_V, attn_mask,
                                         params, n_heads=H, hid_dim=hid)
    jax.block_until_ready((out16, attn16))
    assert out16.shape == (B, S, D) and attn16.shape == (B, H, S, S)
    assert jnp.allclose(out16.astype(jnp.float32), ref_out, rtol=5e-2, atol=5e-2)
    assert jnp.allclose(attn16.astype(jnp.float32), ref_attn, rtol=5e-2, atol=5e-2)

    print("KERNEL_OK")
</pallas_src>

<mosaic_0001>
module attributes {stable_mosaic.version = 11 : i64} {
  func.func @mha_kernel(%arg0: i32, %arg1: memref<1x8x32xf32, #tpu.memory_space<vmem>>, %arg2: memref<1x8x32xf32, #tpu.memory_space<vmem>>, %arg3: memref<1x8x32xf32, #tpu.memory_space<vmem>>, %arg4: memref<1x8x8xbf16, #tpu.memory_space<vmem>>, %arg5: memref<32x64xf32, #tpu.memory_space<vmem>>, %arg6: memref<32x32xf32, #tpu.memory_space<vmem>>, %arg7: memref<32x32xf32, #tpu.memory_space<vmem>>, %arg8: memref<32x32xf32, #tpu.memory_space<vmem>>, %arg9: memref<1x32xf32, #tpu.memory_space<vmem>>, %arg10: memref<1x32xf32, #tpu.memory_space<vmem>>, %arg11: memref<1x8x32xf32, #tpu.memory_space<vmem>>, %arg12: memref<1x4x8x8xf32, #tpu.memory_space<vmem>>) attributes {dimension_semantics = [#tpu.dimension_semantics<parallel>], iteration_bounds = array<i64: 2>, scalar_prefetch = 0 : i64, scratch_operands = 0 : i64, tpu.core_type = #tpu.core_type<tc>, window_params = [{transform_indices = @transform_0, window_bounds = array<i64: 1, 8, 32>}, {transform_indices = @transform_1, window_bounds = array<i64: 1, 8, 32>}, {transform_indices = @transform_2, window_bounds = array<i64: 1, 8, 32>}, {transform_indices = @transform_3, window_bounds = array<i64: 1, 8, 8>}, {pipeline_mode = #tpu.pipeline_mode<synchronous>, transform_indices = @transform_4, window_bounds = array<i64: 32, 64>}, {pipeline_mode = #tpu.pipeline_mode<synchronous>, transform_indices = @transform_5, window_bounds = array<i64: 32, 32>}, {pipeline_mode = #tpu.pipeline_mode<synchronous>, transform_indices = @transform_6, window_bounds = array<i64: 32, 32>}, {pipeline_mode = #tpu.pipeline_mode<synchronous>, transform_indices = @transform_7, window_bounds = array<i64: 32, 32>}, {pipeline_mode = #tpu.pipeline_mode<synchronous>, transform_indices = @transform_8, window_bounds = array<i64: 1, 32>}, {pipeline_mode = #tpu.pipeline_mode<synchronous>, transform_indices = @transform_9, window_bounds = array<i64: 1, 32>}, {transform_indices = @transform_10, window_bounds = array<i64: 1, 8, 32>}, {transform_indices = @transform_11, window_bounds = array<i64: 1, 4, 8, 8>}]} {
    %c0 = arith.constant 0 : index
    %c0_0 = arith.constant 0 : index
    %c0_1 = arith.constant 0 : index
    %0 = vector.load %arg1[%c0, %c0_0, %c0_1] : memref<1x8x32xf32, #tpu.memory_space<vmem>>, vector<1x8x32xf32>
    %1 = vector.shape_cast %0 : vector<1x8x32xf32> to vector<8x32xf32>
    %c0_2 = arith.constant 0 : index
    %c0_3 = arith.constant 0 : index
    %c0_4 = arith.constant 0 : index
    %2 = vector.load %arg2[%c0_2, %c0_3, %c0_4] : memref<1x8x32xf32, #tpu.memory_space<vmem>>, vector<1x8x32xf32>
    %3 = vector.shape_cast %2 : vector<1x8x32xf32> to vector<8x32xf32>
    %c0_5 = arith.constant 0 : index
    %c0_6 = arith.constant 0 : index
    %c0_7 = arith.constant 0 : index
    %4 = vector.load %arg3[%c0_5, %c0_6, %c0_7] : memref<1x8x32xf32, #tpu.memory_space<vmem>>, vector<1x8x32xf32>
    %5 = vector.shape_cast %4 : vector<1x8x32xf32> to vector<8x32xf32>
    %c0_8 = arith.constant 0 : index
    %c0_9 = arith.constant 0 : index
    %6 = vector.load %arg5[%c0_8, %c0_9] : memref<32x64xf32, #tpu.memory_space<vmem>>, vector<32x64xf32>
    %cst = arith.constant dense<0.000000e+00> : vector<8x64xf32>
    %7 = tpu.matmul %1, %6, %cst {dimension_numbers = #tpu.dot_dimension_numbers<[1], [0], [0], [1], [0, 0, 1, 1], [], []>} : vector<8x32xf32>, vector<32x64xf32>, vector<8x64xf32> -> vector<8x64xf32>
    %8 = vector.extract_strided_slice %7 {offsets = [0, 0], sizes = [8, 32], strides = [1, 1]} : vector<8x64xf32> to vector<8x32xf32>
    %9 = vector.extract_strided_slice %7 {offsets = [0, 32], sizes = [8, 32], strides = [1, 1]} : vector<8x64xf32> to vector<8x32xf32>
    %c0_10 = arith.constant 0 : index
    %c0_11 = arith.constant 0 : index
    %10 = vector.load %arg6[%c0_10, %c0_11] : memref<32x32xf32, #tpu.memory_space<vmem>>, vector<32x32xf32>
    %cst_12 = arith.constant dense<0.000000e+00> : vector<8x32xf32>
    %11 = tpu.matmul %3, %10, %cst_12 {dimension_numbers = #tpu.dot_dimension_numbers<[1], [0], [0], [1], [0, 0, 1, 1], [], []>} : vector<8x32xf32>, vector<32x32xf32>, vector<8x32xf32> -> vector<8x32xf32>
    %c0_13 = arith.constant 0 : index
    %c0_14 = arith.constant 0 : index
    %12 = vector.load %arg7[%c0_13, %c0_14] : memref<32x32xf32, #tpu.memory_space<vmem>>, vector<32x32xf32>
    %cst_15 = arith.constant dense<0.000000e+00> : vector<8x32xf32>
    %13 = tpu.matmul %5, %12, %cst_15 {dimension_numbers = #tpu.dot_dimension_numbers<[1], [0], [0], [1], [0, 0, 1, 1], [], []>} : vector<8x32xf32>, vector<32x32xf32>, vector<8x32xf32> -> vector<8x32xf32>
    %14 = vector.extract_strided_slice %9 {offsets = [0, 0], sizes = [8, 8], strides = [1, 1]} : vector<8x32xf32> to vector<8x8xf32>
    %15 = vector.shape_cast %14 : vector<8x8xf32> to vector<1x8x8xf32>
    %16 = vector.extract_strided_slice %9 {offsets = [0, 8], sizes = [8, 8], strides = [1, 1]} : vector<8x32xf32> to vector<8x8xf32>
    %17 = vector.shape_cast %16 : vector<8x8xf32> to vector<1x8x8xf32>
    %18 = vector.extract_strided_slice %9 {offsets = [0, 16], sizes = [8, 8], strides = [1, 1]} : vector<8x32xf32> to vector<8x8xf32>
    %19 = vector.shape_cast %18 : vector<8x8xf32> to vector<1x8x8xf32>
    %20 = vector.extract_strided_slice %9 {offsets = [0, 24], sizes = [8, 8], strides = [1, 1]} : vector<8x32xf32> to vector<8x8xf32>
    %21 = vector.shape_cast %20 : vector<8x8xf32> to vector<1x8x8xf32>
    %22 = vector.shape_cast %15 : vector<1x8x8xf32> to vector<1x1x8x8xf32>
    %23 = vector.shape_cast %17 : vector<1x8x8xf32> to vector<1x1x8x8xf32>
    %24 = vector.shape_cast %19 : vector<1x8x8xf32> to vector<1x1x8x8xf32>
    %25 = vector.shape_cast %21 : vector<1x8x8xf32> to vector<1x1x8x8xf32>
    %26 = tpu.concatenate %22, %23, %24, %25 in 1 : vector<1x1x8x8xf32>, vector<1x1x8x8xf32>, vector<1x1x8x8xf32>, vector<1x1x8x8xf32> -> vector<1x4x8x8xf32>
    %27 = vector.shape_cast %26 : vector<1x4x8x8xf32> to vector<4x8x8xf32>
    %28 = vector.extract_strided_slice %11 {offsets = [0, 0], sizes = [8, 8], strides = [1, 1]} : vector<8x32xf32> to vector<8x8xf32>
    %29 = vector.shape_cast %28 : vector<8x8xf32> to vector<1x8x8xf32>
    %30 = vector.extract_strided_slice %11 {offsets = [0, 8], sizes = [8, 8], strides = [1, 1]} : vector<8x32xf32> to vector<8x8xf32>
    %31 = vector.shape_cast %30 : vector<8x8xf32> to vector<1x8x8xf32>
    %32 = vector.extract_strided_slice %11 {offsets = [0, 16], sizes = [8, 8], strides = [1, 1]} : vector<8x32xf32> to vector<8x8xf32>
    %33 = vector.shape_cast %32 : vector<8x8xf32> to vector<1x8x8xf32>
    %34 = vector.extract_strided_slice %11 {offsets = [0, 24], sizes = [8, 8], strides = [1, 1]} : vector<8x32xf32> to vector<8x8xf32>
    %35 = vector.shape_cast %34 : vector<8x8xf32> to vector<1x8x8xf32>
    %36 = vector.shape_cast %29 : vector<1x8x8xf32> to vector<1x1x8x8xf32>
    %37 = vector.shape_cast %31 : vector<1x8x8xf32> to vector<1x1x8x8xf32>
    %38 = vector.shape_cast %33 : vector<1x8x8xf32> to vector<1x1x8x8xf32>
    %39 = vector.shape_cast %35 : vector<1x8x8xf32> to vector<1x1x8x8xf32>
    %40 = tpu.concatenate %36, %37, %38, %39 in 1 : vector<1x1x8x8xf32>, vector<1x1x8x8xf32>, vector<1x1x8x8xf32>, vector<1x1x8x8xf32> -> vector<1x4x8x8xf32>
    %41 = vector.shape_cast %40 : vector<1x4x8x8xf32> to vector<4x8x8xf32>
    %42 = vector.extract_strided_slice %13 {offsets = [0, 0], sizes = [8, 8], strides = [1, 1]} : vector<8x32xf32> to vector<8x8xf32>
    %43 = vector.shape_cast %42 : vector<8x8xf32> to vector<1x8x8xf32>
    %44 = vector.extract_strided_slice %13 {offsets = [0, 8], sizes = [8, 8], strides = [1, 1]} : vector<8x32xf32> to vector<8x8xf32>
    %45 = vector.shape_cast %44 : vector<8x8xf32> to vector<1x8x8xf32>
    %46 = vector.extract_strided_slice %13 {offsets = [0, 16], sizes = [8, 8], strides = [1, 1]} : vector<8x32xf32> to vector<8x8xf32>
    %47 = vector.shape_cast %46 : vector<8x8xf32> to vector<1x8x8xf32>
    %48 = vector.extract_strided_slice %13 {offsets = [0, 24], sizes = [8, 8], strides = [1, 1]} : vector<8x32xf32> to vector<8x8xf32>
    %49 = vector.shape_cast %48 : vector<8x8xf32> to vector<1x8x8xf32>
    %50 = vector.shape_cast %43 : vector<1x8x8xf32> to vector<1x1x8x8xf32>
    %51 = vector.shape_cast %45 : vector<1x8x8xf32> to vector<1x1x8x8xf32>
    %52 = vector.shape_cast %47 : vector<1x8x8xf32> to vector<1x1x8x8xf32>
    %53 = vector.shape_cast %49 : vector<1x8x8xf32> to vector<1x1x8x8xf32>
    %54 = tpu.concatenate %50, %51, %52, %53 in 1 : vector<1x1x8x8xf32>, vector<1x1x8x8xf32>, vector<1x1x8x8xf32>, vector<1x1x8x8xf32> -> vector<1x4x8x8xf32>
    %55 = vector.shape_cast %54 : vector<1x4x8x8xf32> to vector<4x8x8xf32>
    "tpu.trace_start"() <{level = 10 : i32, message = "gqd,gkd->gqk"}> : () -> ()
    %cst_16 = arith.constant dense<0.000000e+00> : vector<4x8x8xf32>
    %56 = tpu.matmul %27, %41, %cst_16 {dimension_numbers = #tpu.dot_dimension_numbers<[2], [2], [1], [1], [0, 0, 0, 1, 1, 1], [0], [0]>} : vector<4x8x8xf32>, vector<4x8x8xf32>, vector<4x8x8xf32> -> vector<4x8x8xf32>
    "tpu.trace_stop"() : () -> ()
    %57 = vector.shape_cast %56 : vector<4x8x8xf32> to vector<1x4x8x8xf32>
    %c0_17 = arith.constant 0 : index
    %c0_18 = arith.constant 0 : index
    %c0_19 = arith.constant 0 : index
    %58 = vector.load %arg4[%c0_17, %c0_18, %c0_19] : memref<1x8x8xbf16, #tpu.memory_space<vmem>>, vector<1x8x8xbf16>
    %59 = vector.shape_cast %58 : vector<1x8x8xbf16> to vector<1x1x8x8xbf16>
    %60 = arith.extf %59 : vector<1x1x8x8xbf16> to vector<1x1x8x8xf32>
    %61 = vector.broadcast %60 : vector<1x1x8x8xf32> to vector<1x4x8x8xf32>
    %62 = arith.addf %57, %61 : vector<1x4x8x8xf32>
    %cst_20 = arith.constant dense<0xFF800000> : vector<1x4x8xf32>
    %63 = vector.multi_reduction <maximumf>, %62, %cst_20 [3] : vector<1x4x8x8xf32> to vector<1x4x8xf32>
    %64 = vector.shape_cast %63 : vector<1x4x8xf32> to vector<1x4x8x1xf32>
    %65 = vector.broadcast %64 : vector<1x4x8x1xf32> to vector<1x4x8x8xf32>
    %66 = arith.subf %62, %65 : vector<1x4x8x8xf32>
    %67 = math.exp %66 : vector<1x4x8x8xf32>
    %cst_21 = arith.constant dense<0.000000e+00> : vector<1x4x8xf32>
    %68 = vector.multi_reduction <add>, %67, %cst_21 [3] : vector<1x4x8x8xf32> to vector<1x4x8xf32>
    %69 = vector.shape_cast %68 : vector<1x4x8xf32> to vector<1x4x8x1xf32>
    %70 = tpu.reciprocal %69 {approx = true} : vector<1x4x8x1xf32> -> vector<1x4x8x1xf32>
    %71 = arith.mulf %69, %70 : vector<1x4x8x1xf32>
    %cst_22 = arith.constant 2.000000e+00 : f32
    %72 = vector.broadcast %cst_22 : f32 to vector<1x4x8x1xf32>
    %73 = arith.subf %72, %71 : vector<1x4x8x1xf32>
    %74 = arith.mulf %70, %73 : vector<1x4x8x1xf32>
    %75 = vector.broadcast %74 : vector<1x4x8x1xf32> to vector<1x4x8x8xf32>
    %76 = arith.mulf %67, %75 : vector<1x4x8x8xf32>
    %c0_23 = arith.constant 0 : index
    %c0_24 = arith.constant 0 : index
    %c0_25 = arith.constant 0 : index
    %c0_26 = arith.constant 0 : index
    %77 = vector.load %arg12[%c0_23, %c0_24, %c0_25, %c0_26] : memref<1x4x8x8xf32, #tpu.memory_space<vmem>>, vector<1x4x8x8xf32>
    tpu.vector_store %arg12[%c0_23, %c0_24, %c0_25, %c0_26], %76 {strides = array<i32>} : memref<1x4x8x8xf32, #tpu.memory_space<vmem>>, vector<1x4x8x8xf32>,
    %78 = vector.shape_cast %76 : vector<1x4x8x8xf32> to vector<4x8x8xf32>
    "tpu.trace_start"() <{level = 10 : i32, message = "gqk,gkd->gqd"}> : () -> ()
    %cst_27 = arith.constant dense<0.000000e+00> : vector<4x8x8xf32>
    %79 = tpu.matmul %78, %55, %cst_27 {dimension_numbers = #tpu.dot_dimension_numbers<[2], [1], [1], [2], [0, 0, 0, 1, 1, 2], [0], [0]>} : vector<4x8x8xf32>, vector<4x8x8xf32>, vector<4x8x8xf32> -> vector<4x8x8xf32>
    "tpu.trace_stop"() : () -> ()
    %80 = vector.shape_cast %79 : vector<4x8x8xf32> to vector<1x4x8x8xf32>
    %81 = vector.extract_strided_slice %80 {offsets = [0, 0, 0, 0], sizes = [1, 1, 8, 8], strides = [1, 1, 1, 1]} : vector<1x4x8x8xf32> to vector<1x1x8x8xf32>
    %82 = vector.shape_cast %81 : vector<1x1x8x8xf32> to vector<1x8x8xf32>
    %83 = vector.shape_cast %82 : vector<1x8x8xf32> to vector<8x8xf32>
    %84 = vector.extract_strided_slice %80 {offsets = [0, 1, 0, 0], sizes = [1, 1, 8, 8], strides = [1, 1, 1, 1]} : vector<1x4x8x8xf32> to vector<1x1x8x8xf32>
    %85 = vector.shape_cast %84 : vector<1x1x8x8xf32> to vector<1x8x8xf32>
    %86 = vector.shape_cast %85 : vector<1x8x8xf32> to vector<8x8xf32>
    %87 = vector.extract_strided_slice %80 {offsets = [0, 2, 0, 0], sizes = [1, 1, 8, 8], strides = [1, 1, 1, 1]} : vector<1x4x8x8xf32> to vector<1x1x8x8xf32>
    %88 = vector.shape_cast %87 : vector<1x1x8x8xf32> to vector<1x8x8xf32>
    %89 = vector.shape_cast %88 : vector<1x8x8xf32> to vector<8x8xf32>
    %90 = vector.extract_strided_slice %80 {offsets = [0, 3, 0, 0], sizes = [1, 1, 8, 8], strides = [1, 1, 1, 1]} : vector<1x4x8x8xf32> to vector<1x1x8x8xf32>
    %91 = vector.shape_cast %90 : vector<1x1x8x8xf32> to vector<1x8x8xf32>
    %92 = vector.shape_cast %91 : vector<1x8x8xf32> to vector<8x8xf32>
    %93 = tpu.concatenate %83, %86, %89, %92 in 1 : vector<8x8xf32>, vector<8x8xf32>, vector<8x8xf32>, vector<8x8xf32> -> vector<8x32xf32>
    %c0_28 = arith.constant 0 : index
    %c0_29 = arith.constant 0 : index
    %94 = vector.load %arg8[%c0_28, %c0_29] : memref<32x32xf32, #tpu.memory_space<vmem>>, vector<32x32xf32>
    %cst_30 = arith.constant dense<0.000000e+00> : vector<8x32xf32>
    %95 = tpu.matmul %93, %94, %cst_30 {dimension_numbers = #tpu.dot_dimension_numbers<[1], [0], [0], [1], [0, 0, 1, 1], [], []>} : vector<8x32xf32>, vector<32x32xf32>, vector<8x32xf32> -> vector<8x32xf32>
    %96 = arith.addf %95, %8 : vector<8x32xf32>
    %cst_31 = arith.constant dense<0.000000e+00> : vector<8xf32>
    %97 = vector.multi_reduction <add>, %96, %cst_31 [1] : vector<8x32xf32> to vector<8xf32>
    %98 = vector.shape_cast %97 : vector<8xf32> to vector<8x1xf32>
    %cst_32 = arith.constant 3.200000e+01 : f32
    %99 = vector.broadcast %cst_32 : f32 to vector<8x1xf32>
    %100 = arith.divf %98, %99 : vector<8x1xf32>
    %101 = vector.broadcast %100 : vector<8x1xf32> to vector<8x32xf32>
    %102 = arith.subf %96, %101 : vector<8x32xf32>
    %103 = arith.mulf %102, %102 : vector<8x32xf32>
    %cst_33 = arith.constant dense<0.000000e+00> : vector<8xf32>
    %104 = vector.multi_reduction <add>, %103, %cst_33 [1] : vector<8x32xf32> to vector<8xf32>
    %105 = vector.shape_cast %104 : vector<8xf32> to vector<8x1xf32>
    %cst_34 = arith.constant 3.200000e+01 : f32
    %106 = vector.broadcast %cst_34 : f32 to vector<8x1xf32>
    %107 = arith.divf %105, %106 : vector<8x1xf32>
    %108 = vector.broadcast %100 : vector<8x1xf32> to vector<8x32xf32>
    %109 = arith.subf %96, %108 : vector<8x32xf32>
    %cst_35 = arith.constant 9.99999974E-6 : f32
    %110 = vector.broadcast %cst_35 : f32 to vector<8x1xf32>
    %111 = arith.addf %107, %110 : vector<8x1xf32>
    %112 = math.rsqrt %111 : vector<8x1xf32>
    %113 = vector.broadcast %112 : vector<8x1xf32> to vector<8x32xf32>
    %114 = arith.mulf %109, %113 : vector<8x32xf32>
    %c0_36 = arith.constant 0 : index
    %c0_37 = arith.constant 0 : index
    %115 = vector.load %arg9[%c0_36, %c0_37] : memref<1x32xf32, #tpu.memory_space<vmem>>, vector<1x32xf32>
    %116 = vector.broadcast %115 : vector<1x32xf32> to vector<8x32xf32>
    %117 = arith.mulf %114, %116 : vector<8x32xf32>
    %c0_38 = arith.constant 0 : index
    %c0_39 = arith.constant 0 : index
    %118 = vector.load %arg10[%c0_38, %c0_39] : memref<1x32xf32, #tpu.memory_space<vmem>>, vector<1x32xf32>
    %119 = vector.broadcast %118 : vector<1x32xf32> to vector<8x32xf32>
    %120 = arith.addf %117, %119 : vector<8x32xf32>
    %121 = vector.shape_cast %120 : vector<8x32xf32> to vector<1x8x32xf32>
    %c0_40 = arith.constant 0 : index
    %c0_41 = arith.constant 0 : index
    %c0_42 = arith.constant 0 : index
    %122 = vector.load %arg11[%c0_40, %c0_41, %c0_42] : memref<1x8x32xf32, #tpu.memory_space<vmem>>, vector<1x8x32xf32>
    tpu.vector_store %arg11[%c0_40, %c0_41, %c0_42], %121 {strides = array<i32>} : memref<1x8x32xf32, #tpu.memory_space<vmem>>, vector<1x8x32xf32>,
    return
  }
  func.func @transform_0(%arg0: i32) -> (i32, i32, i32) {
    %c0_i32 = arith.constant 0 : i32
    %c0_i32_0 = arith.constant 0 : i32
    %c0_i32_1 = arith.constant 0 : i32
    return %arg0, %c0_i32, %c0_i32_0 : i32, i32, i32
  }
  func.func @transform_1(%arg0: i32) -> (i32, i32, i32) {
    %c0_i32 = arith.constant 0 : i32
    %c0_i32_0 = arith.constant 0 : i32
    %c0_i32_1 = arith.constant 0 : i32
    return %arg0, %c0_i32, %c0_i32_0 : i32, i32, i32
  }
  func.func @transform_2(%arg0: i32) -> (i32, i32, i32) {
    %c0_i32 = arith.constant 0 : i32
    %c0_i32_0 = arith.constant 0 : i32
    %c0_i32_1 = arith.constant 0 : i32
    return %arg0, %c0_i32, %c0_i32_0 : i32, i32, i32
  }
  func.func @transform_3(%arg0: i32) -> (i32, i32, i32) {
    %c0_i32 = arith.constant 0 : i32
    %c0_i32_0 = arith.constant 0 : i32
    %c0_i32_1 = arith.constant 0 : i32
    return %arg0, %c0_i32, %c0_i32_0 : i32, i32, i32
  }
  func.func @transform_4(%arg0: i32) -> (i32, i32) {
    %c0_i32 = arith.constant 0 : i32
    %c0_i32_0 = arith.constant 0 : i32
    %c0_i32_1 = arith.constant 0 : i32
    return %c0_i32, %c0_i32_0 : i32, i32
  }
  func.func @transform_5(%arg0: i32) -> (i32, i32) {
    %c0_i32 = arith.constant 0 : i32
    %c0_i32_0 = arith.constant 0 : i32
    %c0_i32_1 = arith.constant 0 : i32
    return %c0_i32, %c0_i32_0 : i32, i32
  }
  func.func @transform_6(%arg0: i32) -> (i32, i32) {
    %c0_i32 = arith.constant 0 : i32
    %c0_i32_0 = arith.constant 0 : i32
    %c0_i32_1 = arith.constant 0 : i32
    return %c0_i32, %c0_i32_0 : i32, i32
  }
  func.func @transform_7(%arg0: i32) -> (i32, i32) {
    %c0_i32 = arith.constant 0 : i32
    %c0_i32_0 = arith.constant 0 : i32
    %c0_i32_1 = arith.constant 0 : i32
    return %c0_i32, %c0_i32_0 : i32, i32
  }
  func.func @transform_8(%arg0: i32) -> (i32, i32) {
    %c0_i32 = arith.constant 0 : i32
    %c0_i32_0 = arith.constant 0 : i32
    %c0_i32_1 = arith.constant 0 : i32
    return %c0_i32, %c0_i32_0 : i32, i32
  }
  func.func @transform_9(%arg0: i32) -> (i32, i32) {
    %c0_i32 = arith.constant 0 : i32
    %c0_i32_0 = arith.constant 0 : i32
    %c0_i32_1 = arith.constant 0 : i32
    return %c0_i32, %c0_i32_0 : i32, i32
  }
  func.func @transform_10(%arg0: i32) -> (i32, i32, i32) {
    %c0_i32 = arith.constant 0 : i32
    %c0_i32_0 = arith.constant 0 : i32
    %c0_i32_1 = arith.constant 0 : i32
    return %arg0, %c0_i32, %c0_i32_0 : i32, i32, i32
  }
  func.func @transform_11(%arg0: i32) -> (i32, i32, i32, i32) {
    %c0_i32 = arith.constant 0 : i32
    %c0_i32_0 = arith.constant 0 : i32
    %c0_i32_1 = arith.constant 0 : i32
    %c0_i32_2 = arith.constant 0 : i32
    return %arg0, %c0_i32, %c0_i32_0, %c0_i32_1 : i32, i32, i32, i32
  }
}

</mosaic_0001>

<bundles_post_ra>
// kernel: tpu_custom_call.1
= control target key start
LH: loop header
LB: loop body
LE: loop exit
PB: predicated region body
PF: predicated region fallthrough
CT: control target
= control target key end

     0   :  { %s3064_s0 = inlined_call_operand.hbm [shape: f32[2,8,32], index: 0, kind: input, shape index: {}]   ;;  %s3065_s1 = inlined_call_operand.hbm [shape: f32[2,8,32], index: 1, kind: input, shape index: {}]   ;;  %s3066_s2 = inlined_call_operand.hbm [shape: f32[2,8,32], index: 2, kind: input, shape index: {}]   ;;  %s3067_s3 = inlined_call_operand.vmem [shape: bf16[2,8,8], index: 3, kind: input, shape index: {}]   ;;  %s3068_s4 = inlined_call_operand.hbm [shape: f32[32,64], index: 4, kind: input, shape index: {}]   ;;  %s3069_s5 = inlined_call_operand.hbm [shape: f32[32,32], index: 5, kind: input, shape index: {}]   ;;  %s3070_s6 = inlined_call_operand.hbm [shape: f32[32,32], index: 6, kind: input, shape index: {}]   ;;  %s3071_s7 = inlined_call_operand.hbm [shape: f32[32,32], index: 7, kind: input, shape index: {}]   ;;  %s3072_s8 = inlined_call_operand.vmem [shape: f32[1,32], index: 8, kind: input, shape index: {}]   ;;  %s3073_s9 = inlined_call_operand.vmem [shape: f32[1,32], index: 9, kind: input, shape index: {}]   ;;  %s3074_s10 = inlined_call_operand.hbm [shape: f32[2,8,32], index: 10, kind: output, shape index: {0}]   ;;  %s3075_s11 = inlined_call_operand.hbm [shape: f32[2,4,8,8], index: 11, kind: output, shape index: {1}]  }
   0x1   :  { %3102 = sst [smem:[#allocation29_spill]] %s3065_s1 }
   0x2   :  { %3103 = sst [smem:[#allocation30_spill]] %s3068_s4 }
   0x3   :  { %3104 = sst [smem:[#allocation31_spill]] %s3070_s6 }
   0x4   :  { %3105 = sst [smem:[#allocation32_spill]] %s3072_s8 }
   0x5   :  { %3106 = sst [smem:[#allocation33_spill]] %s3073_s9 }
   0x6   :  { %3107 = sst [smem:[#allocation34_spill]] %s3074_s10 }
   0x7   :  { %3108 = sst [smem:[#allocation35_spill]] %s3075_s11 }
   0x8   :  { %17 = vsyncpa [#allocation3], 0 }
   0x9   :  { %19 = vsyncpa [#allocation3 + $0x1], 0 }
   0xa   :  { %20 = vsyncpa [#allocation6], 0 }
   0xb   :  { %22 = vsyncpa [#allocation6 + $0x1], 0 }
   0xc   :  { %23 = vsyncpa [#allocation9], 0 }
   0xd   :  { %24 = vsyncpa [#allocation12], 0 }
   0xe   :  { %25 = vsyncpa [#allocation4], 0 }
   0xf   :  { %27 = vsyncpa [#allocation4 + $0x1], 0 }
  0x10   :  { %28 = vsyncpa [#allocation16], 0 }
  0x11   :  { %30 = vsyncpa [#allocation16 + $0x1], 0  ;;  %s2559_s17 = smov 0   ;;  %s2561_s18 = smov 0  }
  0x12   :  { %s2563_s19 = smov 0   ;;  %s2565_s20 = smov 0  }
  0x13 LB: > { %3109 = sst [smem:[#allocation23_spill]] %s2463_s17  ;;  %s2477_s21 = smov [#allocation8]   ;;  %s2475_s20 = sphi %s2565_s20, %s3151_s20   ;;  %s2471_s19 = sphi %s2563_s19, %s3155_s19   ;;  %s2467_s18 = sphi %s2561_s18, %s3154_s18   ;;  %s2463_s17 = sphi %s2559_s17, %s3153_s17  }
  0x14   : > { %3110 = sst [smem:[#allocation24_spill]] %s2475_s20  ;;  %s335_s22 = sshll.u32 %s2477_s21, 4  ;;  %s2585_s22 = int_to_ptr.vmem [resolvable:$true] %s335_s22 }
  0x15   : > { %s2580_s23 = sadd.s32 4294967295, %s2475_s20   ;;  %p1837_p0 = scmp.ge.s32.totalorder %s2475_s20, 1 }
  0x16   : > { %p3088_p1 = scmp.eq.s32.totalorder %s2580_s23, 0  ;;  %p323_p2 = scmp.lt.s32.totalorder %s2475_s20, 3 }
  0x17   : > { %s2478_s25 = smov [#allocation11]   ;;  %s3113_s4 = sld [smem:[#allocation30_spill]] }
  0x18   : > { %p2587_p3 = pnand %p1837_p0, %p323_p2  ;;  %s361_s26 = sshll.u32 %s2478_s25, 4  ;;  %s2600_s26 = int_to_ptr.vmem [resolvable:$true] %s361_s26 }
  0x1a   : > { %s3111_s24 = scalar_select %p2587_p3, 1, 0 }
  0x1b   : > { %p2056_p5 = pneg %p2587_p3 }
  0x1d   : > { %p2596_p6 = pnand %p2056_p5, %p3088_p1  ;;  %s2163_s30 = scalar_lea.hbm %s3113_s4, 512 }
  0x1e   : > { %p2164_p7 = scmp.ne.s32.totalorder %s3113_s4, %s2163_s30  ;;  %p2170_p11 = scmp.lt.u32.totalorder %s2163_s30, %s3113_s4 }
  0x1f   : > { %s3112_s27 = scalar_select %p2596_p6, 1, 0 }
  0x20   : > { %p2610_p8 = pneg %p2596_p6 }
  0x22   : > { %s3114_s14 = scalar_select %p2610_p8, 1, 0 }
  0x23   : > { %p2166_p9 = pnand %p2610_p8, %p2164_p7 }
  0x25   : > { %p2167_p10 = pneg %p2166_p9 }
  0x27   : > { %p2172_p12 = pnand %p2170_p11, %p2167_p10 }
  0x29   : > { %2175 = shalt.err (!%p2172_p12)
}
  0x2a   : > { %s2176_s21 = scalar_lea.vmem %s2585_s22, 512  ;;  %p2184_p5 = scmp.lt.s32.totalorder %s2585_s22, %s2585_s22 }
  0x2b   : > { %p2177_p13 = scmp.ne.s32.totalorder %s2585_s22, %s2176_s21  ;;  %p2185_p4 = scmp.lt.s32.totalorder %s2176_s21, %s2176_s21 }
  0x2d   : > { %p2179_p0 = pnand %p2177_p13, %p2610_p8  ;;  %p2186_p7 = por %p2185_p4, %p2184_p5 }
  0x2f   : > { %p2180_p2 = pneg %p2179_p0 }
  0x31   : > { %p2187_p9 = pnand %p2186_p7, %p2180_p2 }
  0x33   : > { %2190 = shalt.err (!%p2187_p9)
}
  0x34   : > { %s3078_s25 = smov 128   ;;  %s3080_s28 = smov 8  }
  0x35   : > { %2059 = dma.hbm_to_vmem [thread:$0]  (!%p2596_p6), %s3113_s4, 512, %s2585_s22, [#allocation9], %s3078_s25, %s3078_s25, %s3080_s28  }
  0x36   : > { %s3115_s6 = sld [smem:[#allocation31_spill]] }
  0x3c   : > { %s2191_s15 = scalar_lea.hbm %s3115_s6, 512 }
  0x3d   : > { %p2192_p4 = scmp.ne.s32.totalorder %s3115_s6, %s2191_s15  ;;  %p2198_p12 = scmp.lt.u32.totalorder %s2191_s15, %s3115_s6 }
  0x3f   : > { %p2194_p10 = pnand %p2192_p4, %p2610_p8 }
  0x41   : > { %p2195_p11 = pneg %p2194_p10 }
  0x43   : > { %p2200_p13 = pnand %p2198_p12, %p2195_p11 }
  0x45   : > { %2203 = shalt.err (!%p2200_p13)
}
  0x46   : > { %s2204_s22 = scalar_lea.vmem %s2600_s26, 512  ;;  %p2212_p7 = scmp.lt.s32.totalorder %s2600_s26, %s2600_s26 }
  0x47   : > { %p2205_p0 = scmp.ne.s32.totalorder %s2600_s26, %s2204_s22  ;;  %p2213_p9 = scmp.lt.s32.totalorder %s2204_s22, %s2204_s22 }
  0x49   : > { %p2207_p2 = pnand %p2205_p0, %p2610_p8  ;;  %p2214_p4 = por %p2213_p9, %p2212_p7 }
  0x4b   : > { %p2208_p5 = pneg %p2207_p2 }
  0x4d   : > { %p2215_p10 = pnand %p2214_p4, %p2208_p5 }
  0x4f   : > { %2218 = shalt.err (!%p2215_p10)
}
  0x50   : > { %2065 = dma.hbm_to_vmem [thread:$0]  (!%p2596_p6), %s3115_s6, 512, %s2600_s26, [#allocation12], %s3078_s25, %s3078_s25, %s3080_s28  }
  0x51   : > { %s1836_s29 = sadd.s32 4294967294, %s2475_s20   ;;  %s2662_s30 = sadd.s32 1, %s2475_s20  }
  0x52   : > { %3116 = sst [smem:[#allocation25_spill]] %s2662_s30  ;;  %s40_s12 = ssub.s32 %s2475_s20, %s2662_s30 }
  0x53   : > { %s43_s13 = sadd.s32 1, %s2471_s19  ;;  %p41_p11 = scmp.eq.s32.totalorder %s40_s12, 0 }
  0x54   : > { %p50_p12 = scmp.ne.s32.totalorder %s2471_s19, %s2467_s18  ;;  %p51_p13 = scmp.eq.s32.totalorder %s2475_s20, 0 }
  0x55   : > { %p56_p0 = scmp.ne.s32.totalorder %s2467_s18, %s2463_s17  ;;  %p284_p7 = scmp.eq.s32.totalorder %s2580_s23, 1 }
  0x56   : > { %s2673_s15 = scalar_select %p41_p11, %s2471_s19, %s43_s13  }
  0x57   : > { %p52_p2 = por %p51_p13, %p50_p12  ;;  %p2677_p5 = por %p3088_p1, %p56_p0 }
  0x58   : > { %3117 = sst [smem:[#allocation26_spill]] %s2673_s15  ;;  %p290_p9 = scmp.eq.s32.totalorder %s1836_s29, 1 }
  0x59   : > { %s3118_s16 = scalar_select %p2677_p5, 1, 0 }
  0x5a   : > { %p2090_p4 = scmp.lt.s32.totalorder %s2475_s20, 2  ;;  %s3082_s26 = sand.u32 1, %s2471_s19  }
  0x5b   : > { %p2684_p10 = por %p284_p7, %p50_p12  ;;  %p2688_p3 = por %p290_p9, %p56_p0 }
  0x5c   : > { %s2694_s9 = sshll.u32 %s3082_s26, 3  ;;  %s2697_s10 = sshll.u32 %s2475_s20, 7 }
  0x5d   : > { %s3119_s21 = scalar_select %p2684_p10, 1, 0 }
  0x5e   : > { %s3121_s22 = scalar_select %p2688_p3, 1, 0 }
  0x5f   : > { %3120 = sst [smem:[#allocation27_spill]] %s3119_s21  ;;  %p2699_p11 = pnand %p2090_p4, %p52_p2 }
  0x60   : > { %3122 = sst [smem:[#allocation28_spill]] %s3121_s22  ;;  %s412_s29 = sand.u32 1, %s2475_s20  }
  0x61   : > { %s3123_s12 = scalar_select %p2699_p11, 1, 0 }
  0x62   : > { %s3124_s1 = sld [smem:[#allocation29_spill]]  ;;  %s416_s26 = scalar_lea.vmem [#allocation5], %s2694_s9 }
  0x63   : > { %s423_s4 = sshll.u32 %s416_s26, 4  ;;  %s2481_s6 = smov [#allocation10]   ;;  %s2711_s4 = int_to_ptr.vmem [resolvable:$true] %s423_s4 }
  0x64   : > { %s2713_s15 = sshll.u32 %s2481_s6, 4  ;;  %s2715_s30 = scalar_lea.sflag [#allocation6], %s412_s29  ;;  %s349_s15 = int_to_ptr.vmem [resolvable:$true] %s2713_s15 }
  0x65   : > { %p2721_p13 = pneg %p2699_p11 }
  0x67   : > { %s3125_s25 = scalar_select %p2721_p13, 1, 0 }
  0x68   : > { %s2708_s28 = scalar_lea.hbm %s3124_s1, %s2697_s10  ;;  %s2224_s20 = scalar_lea.hbm %s3124_s1, 256 }
  0x69   : > { %s2219_s22 = scalar_lea.hbm %s2708_s28, 128  ;;  %p2225_p7 = scmp.lt.u32.totalorder %s2708_s28, %s3124_s1 }
  0x6a   : > { %p2220_p12 = scmp.ne.s32.totalorder %s2708_s28, %s2219_s22  ;;  %p2226_p9 = scmp.lt.u32.totalorder %s2224_s20, %s2219_s22 }
  0x6b   : > { %p2228_p1 = scmp.lt.u32.totalorder %s2219_s22, %s2708_s28 }
  0x6c   : > { %p2222_p0 = pnand %p2721_p13, %p2220_p12  ;;  %p2227_p4 = por %p2226_p9, %p2225_p7 }
  0x6e   : > { %p2223_p2 = pneg %p2222_p0  ;;  %p2229_p3 = por %p2228_p1, %p2227_p4 }
  0x70   : > { %p2230_p10 = pnand %p2229_p3, %p2223_p2 }
  0x72   : > { %2233 = shalt.err (!%p2230_p10)
}
  0x73   : > { %s2234_s29 = scalar_lea.vmem %s2711_s4, 128  ;;  %s2482_s13 = smov [#allocation5]  }
  0x74   : > { %p2235_p12 = scmp.ne.s32.totalorder %s2711_s4, %s2234_s29  ;;  %s2239_s26 = sshll.u32 %s2482_s13, 4  ;;  %s2240_s26 = int_to_ptr.vmem [resolvable:$false] %s2239_s26 }
  0x75   : > { %s2241_s17 = scalar_lea.vmem %s2240_s26, 256  ;;  %p2242_p6 = scmp.lt.s32.totalorder %s2711_s4, %s2240_s26 }
  0x76   : > { %p2237_p0 = pnand %p2235_p12, %p2721_p13  ;;  %p2243_p8 = scmp.lt.s32.totalorder %s2241_s17, %s2234_s29 }
  0x78   : > { %p2238_p5 = pneg %p2237_p0  ;;  %p2244_p7 = por %p2243_p8, %p2242_p6 }
  0x7a   : > { %p2245_p9 = pnand %p2244_p7, %p2238_p5 }
  0x7c   : > { %2248 = shalt.err (!%p2245_p9)
}
  0x7d   : > { %2075 = dma.hbm_to_vmem [thread:$0]  (!%p2699_p11), %s2708_s28, 128, %s2711_s4, %s2715_s30  }
  0x7e   : > { %s2249_s6 = scalar_lea.hbm %s3069_s5, 512  ;;  %p3126_p3 = scmp.ne.s32.totalorder %s3114_s14, 0 }
  0x7f   : > { %p2250_p1 = scmp.ne.s32.totalorder %s3069_s5, %s2249_s6  ;;  %p2256_p5 = scmp.lt.u32.totalorder %s2249_s6, %s3069_s5 }
  0x81   : > { %p2252_p6 = pnand %p2250_p1, %p3126_p3 }
  0x83   : > { %p2253_p8 = pneg %p2252_p6 }
  0x85   : > { %p2258_p10 = pnand %p2256_p5, %p2253_p8 }
  0x87   : > { %2261 = shalt.err (!%p2258_p10)
}
  0x88   : > { %s2262_s17 = scalar_lea.vmem %s349_s15, 512  ;;  %p2270_p0 = scmp.lt.s32.totalorder %s349_s15, %s349_s15 }
  0x89   : > { %p2263_p2 = scmp.ne.s32.totalorder %s349_s15, %s2262_s17  ;;  %p2271_p7 = scmp.lt.s32.totalorder %s2262_s17, %s2262_s17 }
  0x8b   : > { %p2265_p4 = pnand %p2263_p2, %p3126_p3  ;;  %p2272_p9 = por %p2271_p7, %p2270_p0 }
  0x8d   : > { %p2266_p12 = pneg %p2265_p4 }
  0x8f   : > { %p2273_p11 = pnand %p2272_p9, %p2266_p12 }
  0x91   : > { %2276 = shalt.err (!%p2273_p11)
}
  0x92   : > { %p3127_p1 = scmp.ne.s32.totalorder %s3112_s27, 0  ;;  %s3128_s1 = smov 8  }
  0x93   : > { %s3129_s4 = smov 128   ;;  %s2483_s22 = smov [#allocation13]  }
  0x94   : > { %2062 = dma.hbm_to_vmem [thread:$0]  (!%p3127_p1), %s3069_s5, 512, %s349_s15, [#allocation9], %s3129_s4, %s3129_s4, %s3128_s1  }
  0x95   : > { %s374_s6 = sshll.u32 %s2483_s22, 4  ;;  %s2277_s26 = scalar_lea.hbm %s3071_s7, 512  ;;  %s375_s6 = int_to_ptr.vmem [resolvable:$true] %s374_s6 }
  0x96   : > { %p2278_p11 = scmp.ne.s32.totalorder %s3071_s7, %s2277_s26  ;;  %p2284_p5 = scmp.lt.u32.totalorder %s2277_s26, %s3071_s7 }
  0x98   : > { %p2280_p6 = pnand %p2278_p11, %p3126_p3 }
  0x9a   : > { %p2281_p8 = pneg %p2280_p6 }
  0x9c   : > { %p2286_p10 = pnand %p2284_p5, %p2281_p8 }
  0x9e   : > { %2289 = shalt.err (!%p2286_p10)
}
  0x9f   : > { %s2290_s15 = scalar_lea.vmem %s375_s6, 512  ;;  %p2298_p0 = scmp.lt.s32.totalorder %s375_s6, %s375_s6 }
  0xa0   : > { %p2291_p2 = scmp.ne.s32.totalorder %s375_s6, %s2290_s15  ;;  %p2299_p7 = scmp.lt.s32.totalorder %s2290_s15, %s2290_s15 }
  0xa2   : > { %p2293_p4 = pnand %p2291_p2, %p3126_p3  ;;  %p2300_p9 = por %p2299_p7, %p2298_p0 }
  0xa4   : > { %p2294_p12 = pneg %p2293_p4 }
  0xa6   : > { %p2301_p13 = pnand %p2300_p9, %p2294_p12 }
  0xa8   : > { %2304 = shalt.err (!%p2301_p13)
}
  0xa9   : > { %2068 = dma.hbm_to_vmem [thread:$0]  (!%p3127_p1), %s3071_s7, 512, %s375_s6, [#allocation12], %s3129_s4, %s3129_s4, %s3128_s1  }
  0xaa   : > { %s2792_s28 = scalar_lea.hbm %s3064_s0, %s2697_s10  ;;  %s398_s27 = scalar_lea.vmem [#allocation2], %s2694_s9 }
  0xab   : > { %s405_s20 = sshll.u32 %s398_s27, 4  ;;  %s3130_s22 = sand.u32 1, %s2471_s19   ;;  %s406_s20 = int_to_ptr.vmem [resolvable:$true] %s405_s20 }
  0xac   : > { %s395_s13 = scalar_lea.sflag [#allocation3], %s3130_s22  ;;  %s2305_s29 = scalar_lea.hbm %s2792_s28, 128 }
  0xad   : > { %p2306_p13 = scmp.ne.s32.totalorder %s2792_s28, %s2305_s29  ;;  %p3131_p3 = scmp.ne.s32.totalorder %s3125_s25, 0 }
  0xae   : > { %s2310_s6 = scalar_lea.hbm %s3064_s0, 256  ;;  %p2311_p1 = scmp.lt.u32.totalorder %s2792_s28, %s3064_s0 }
  0xaf   : > { %p2308_p11 = pnand %p2306_p13, %p3131_p3  ;;  %p2312_p8 = scmp.lt.u32.totalorder %s2310_s6, %s2305_s29 }
  0xb0   : > { %p2314_p10 = scmp.lt.u32.totalorder %s2305_s29, %s2792_s28 }
  0xb1   : > { %p2309_p6 = pneg %p2308_p11  ;;  %p2313_p5 = por %p2312_p8, %p2311_p1 }
  0xb3   : > { %p2315_p2 = por %p2314_p10, %p2313_p5 }
  0xb5   : > { %p2316_p4 = pnand %p2315_p2, %p2309_p6 }
  0xb7   : > { %2319 = shalt.err (!%p2316_p4)
}
  0xb8   : > { %s2320_s15 = scalar_lea.vmem %s406_s20, 128  ;;  %s2484_s8 = smov [#allocation2]  }
  0xb9   : > { %p2321_p12 = scmp.ne.s32.totalorder %s406_s20, %s2320_s15  ;;  %s2325_s11 = sshll.u32 %s2484_s8, 4  ;;  %s2326_s11 = int_to_ptr.vmem [resolvable:$false] %s2325_s11 }
  0xba   : > { %s2327_s14 = scalar_lea.vmem %s2326_s11, 256  ;;  %p2328_p9 = scmp.lt.s32.totalorder %s406_s20, %s2326_s11 }
  0xbb   : > { %p2323_p0 = pnand %p2321_p12, %p3131_p3  ;;  %p2329_p13 = scmp.lt.s32.totalorder %s2327_s14, %s2320_s15 }
  0xbd   : > { %p2324_p7 = pneg %p2323_p0  ;;  %p2330_p11 = por %p2329_p13, %p2328_p9 }
  0xbf   : > { %p2331_p1 = pnand %p2330_p11, %p2324_p7 }
  0xc1   : > { %2334 = shalt.err (!%p2331_p1)
}
  0xc2   : > { %p3132_p8 = scmp.ne.s32.totalorder %s3123_s12, 0  ;;  %s2818_s22 = scalar_lea.hbm %s3066_s2, %s2697_s10 }
  0xc3   : > { %s434_s29 = scalar_lea.vmem [#allocation7], %s2694_s9  ;;  %s2335_s4 = scalar_lea.hbm %s2818_s22, 128 }
  0xc4   : > { %2072 = dma.hbm_to_vmem [thread:$0]  (!%p3132_p8), %s2792_s28, 128, %s406_s20, %s395_s13  }
  0xc5   : > { %s441_s1 = sshll.u32 %s434_s29, 4  ;;  %p2336_p6 = scmp.ne.s32.totalorder %s2818_s22, %s2335_s4  ;;  %s442_s1 = int_to_ptr.vmem [resolvable:$true] %s441_s1 }
  0xc6   : > { %s2340_s28 = scalar_lea.hbm %s3066_s2, 256  ;;  %p2341_p2 = scmp.lt.u32.totalorder %s2818_s22, %s3066_s2 }
  0xc7   : > { %p2338_p5 = pnand %p2336_p6, %p3131_p3  ;;  %p2342_p4 = scmp.lt.u32.totalorder %s2340_s28, %s2335_s4 }
  0xc8   : > { %p2344_p0 = scmp.lt.u32.totalorder %s2335_s4, %s2818_s22 }
  0xc9   : > { %p2339_p10 = pneg %p2338_p5  ;;  %p2343_p12 = por %p2342_p4, %p2341_p2 }
  0xcb   : > { %p2345_p7 = por %p2344_p0, %p2343_p12 }
  0xcd   : > { %p2346_p9 = pnand %p2345_p7, %p2339_p10 }
  0xcf   : > { %2349 = shalt.err (!%p2346_p9)
}
  0xd0   : > { %s2350_s9 = scalar_lea.vmem %s442_s1, 128  ;;  %s2485_s10 = smov [#allocation7]  }
  0xd1   : > { %p2351_p13 = scmp.ne.s32.totalorder %s442_s1, %s2350_s9  ;;  %s2355_s17 = sshll.u32 %s2485_s10, 4  ;;  %s2356_s17 = int_to_ptr.vmem [resolvable:$false] %s2355_s17 }
  0xd2   : > { %s2357_s15 = scalar_lea.vmem %s2356_s17, 256  ;;  %p2358_p6 = scmp.lt.s32.totalorder %s442_s1, %s2356_s17 }
  0xd3   : > { %p2353_p11 = pnand %p2351_p13, %p3131_p3  ;;  %p2359_p5 = scmp.lt.s32.totalorder %s2357_s15, %s2350_s9 }
  0xd5   : > { %p2354_p1 = pneg %p2353_p11  ;;  %p2360_p8 = por %p2359_p5, %p2358_p6 }
  0xd7   : > { %p2361_p2 = pnand %p2360_p8, %p2354_p1 }
  0xd9   : > { %2364 = shalt.err (!%p2361_p2)
}
  0xda   : > { %p3133_p4 = scmp.ne.s32.totalorder %s3123_s12, 0  ;;  %p3134_p10 = scmp.ne.s32.totalorder %s3111_s24, 0 }
  0xdb   : > { %s2842_s25 = sand.u32 (!%p3134_p10), 1, %s2467_s18   ;;  %p3135_p3 = scmp.ne.s32.totalorder (!%p3134_p10), %s3118_s16, 0 }
  0xdc   : > { %2078 = dma.hbm_to_vmem [thread:$0]  (!%p3133_p4), %s2818_s22, 128, %s442_s1, %s2715_s30  }
  0xdd   : > { %457 = sbr.rel (%p3134_p10) target bundleno = 2101 (0x835), region = 60  ;;  %s2845_s8 = sshll.u32 (!%p3134_p10), %s2842_s25, 3 }
  0xde   : > { %s460_s11 = scalar_lea.sflag (!%p3134_p10), [#allocation3], %s2842_s25  ;;  %s463_s14 = scalar_lea.vmem (!%p3134_p10), [#allocation2], %s2845_s8 }
  0xe4   : > { %2438 = dma.done.wait (%p3135_p3), %s460_s11, 128  }
  0xe5   : > { %2440 = vsyncadd (%p3135_p3), %s460_s11, 4294967168  ;;  %s468_s24 = sand.u32 1, %s2580_s23   ;;  %s472_s12 = scalar_lea.vmem [#allocation5], %s2845_s8 }
  0xe6   : > { %s469_s30 = scalar_lea.sflag [#allocation6], %s468_s24 }
  0xe7   : > { %2442 = dma.done.wait (%p3135_p3), %s469_s30, 256  }
  0xe8   : > { %2444 = vsyncadd (%p3135_p3), %s469_s30, 4294967040  ;;  %s481_s21 = scalar_lea.vmem [#allocation7], %s2845_s8  ;;  %p3136_p8 = scmp.eq.s32.totalorder %s2580_s23, 0 }
  0xea   : > { %2446 = dma.done.wait (%p3136_p8), [#allocation9], 1024   ;;  %p3137_p12 = pmov %p3136_p8 }
  0xeb   : > { %p3138_p0 = pmov %p3136_p8 }
  0xec   : > { %2448 = vsyncadd (%p3137_p12), [#allocation9], 4294966272 }
  0xed   : > { %2450 = dma.done.wait (%p3138_p0), [#allocation12], 1024   ;;  %p3139_p7 = pmov %p3138_p0 }
  0xee   : > { %v2486_v0 = vmov 0.0|0.0   ;;  %vm2487_vm0 = vmmov 0   ;;  %v2488_v1 = vmov 0.0   ;;  %v562_v2 = vld [vmem:[#allocation8] sm:$0xff]  ;;  %v563_v3 = vld [vmem:[#allocation8 + $0x8] sm:$0xff]  ;;  %v564_v4 = vld [vmem:[#allocation8 + $0x10] sm:$0xff] }
  0xef   : > { %2452 = vsyncadd (%p3139_p7), [#allocation12], 4294966272  ;;  %2006 = vmatprep.subr.bf16.mxu0 %v2486_v0  ;;  %1930 = vmatprep.mubr.msk.f32.mxu0 %vm2487_vm0, %v2488_v1  ;;  %v2007_v5 = vpack.c.bf16 %v563_v3, %v562_v2  ;;  %v565_v6 = vld [vmem:[#allocation8 + $0x18] sm:$0xff]  ;;  %v640_v7 = vld [vmem:[#allocation10] sm:$0xff]  ;;  %vm566_vm1 = vcmask 261120   ;;  %vm820_vm2 = vcmask 64512  }
  0xf0   : > { %2012 = vmatprep.subr.bf16.mxu1 %v2486_v0  ;;  %1941 = vmatprep.mubr.msk.f32.mxu1 %vm2487_vm0, %v2488_v1  ;;  %v641_v8 = vld [vmem:[#allocation10 + $0x8] sm:$0xff]  ;;  %v642_v9 = vld [vmem:[#allocation10 + $0x10] sm:$0xff]  ;;  %v643_v10 = vld [vmem:[#allocation10 + $0x18] sm:$0xff]  ;;  %v2010_v11 = vpack.c.bf16 %v565_v6, %v564_v4  ;;  %s2489_s16 = smov 104   ;;  %s2490_s27 = smov 120   ;;  %vm1494_vm3 = vcmask 130048  }
  0xf1   : > { %2008 = vmatpush3.bf16.msra.mxu0 %v2007_v5  ;;  %v2013_v12 = vpack.c.bf16 %v641_v8, %v640_v7  ;;  %v2016_v13 = vpack.c.bf16 %v643_v10, %v642_v9  ;;  %v559_v14 = vld [vmem:[%s463_s14] sm:$0xff]  ;;  %v560_v15 = vld [vmem:[%s472_s12] sm:$0xff]  ;;  %s2491_s22 = smov 96   ;;  %s2492_s29 = smov 112   ;;  %vm1496_vm4 = vcmask 195584  }
  0xf2   : > { %2009 = vmatprep.subr.bf16.mxu0 %v2486_v0  ;;  %v717_v20 = vld [vmem:[#allocation11] sm:$0xff]  ;;  %v718_v21 = vld [vmem:[#allocation11 + $0x8] sm:$0xff]  ;;  %v719_v22 = vld [vmem:[#allocation11 + $0x10] sm:$0xff]  ;;  %p555_p9 = scmp.lt.s32.totalorder %s2580_s23, 1  ;;  %s1858_s20 = sshll.u32 %s2842_s25, 5 }
  0xf3   : > { %2014 = vmatpush3.bf16.msra.mxu1 %v2013_v12  ;;  %v2019_v23 = vpack.c.bf16 %v718_v21, %v717_v20  ;;  %v720_v24 = vld [vmem:[#allocation11 + $0x18] sm:$0xff]  ;;  %s2946_s13 = scalar_lea.vmem [#allocation15], %s1858_s20  ;;  %s2493_s9 = smov 8  }
  0xf4   : > { %2015 = vmatprep.subr.bf16.mxu1 %v2486_v0  ;;  %v2022_v25 = vpack.c.bf16 %v720_v24, %v719_v22  ;;  %v561_v28 = vld [vmem:[%s481_s21] sm:$0xff]  ;;  %s556_s1 = scalar_select %p555_p9, %s2580_s23, 1 }
  0xf5   : > { %2011 = vmatpush3.bf16.msra.mxu0 %v2010_v11  ;;  %s2494_s10 = smov 16   ;;  %s2495_s17 = smov 24  }
  0xf6   : > { %2018 = vmatprep.subr.bf16.mxu0 %v2486_v0  ;;  %s1859_s4 = sshll.u32 %s556_s1, 2  ;;  %s3140_s15 = sld [smem:[#allocation27_spill]] }
  0xf7   : > { %2017 = vmatpush3.bf16.msra.mxu1 %v2016_v13  ;;  %s558_s28 = scalar_lea.vmem %s3067_s3, %s1859_s4  ;;  %s1885_s11 = sshll.u32 %s2580_s23, 9 }
  0xf8   : > { %1931 = vmatmul.mubr.msk.f32.vlgmr.msra.gmra.mrb[0].mxu0 %vm566_vm1, %v559_v14  ;;  %1955 = vmatprep.subr.mxu1 %v2488_v1  ;;  %v1123_v37 = vld [vmem:[%s558_s28] sm:$0xf]  ;;  %s1638_s14 = sshll.u32 %s2946_s13, 4  ;;  %s3141_s12 = sld [smem:[#allocation35_spill]]  ;;  %s2981_s14 = int_to_ptr.vmem [resolvable:$true] %s1638_s14 }
  0xf9   : > { %1952 = vmatprep.mubr.msk.f32.mxu0 %vm2487_vm0, %v2488_v1  ;;  %2020 = vmatpush3.bf16.msra.mxu0 %v2019_v23  ;;  %v1124_v38 = vunpack.c.l.bf16 %v1123_v37 }
  0xfa   : > { %1942 = vmatmul.mubr.msk.f32.vlgmr.msra.gmra.mrb[0].mxu1 %vm566_vm1, %v560_v15  ;;  %2021 = vmatprep.subr.bf16.mxu0 %v2486_v0 }
  0xfb   : > { %1957 = vmatprep.mubr.msk.f32.mxu1 %vm2487_vm0, %v2488_v1 }
  0xfc   : > { %p3142_p11 = scmp.ne.s32.totalorder %s3140_s15, 0 }
  0xfd   : > { %2023 = vmatpush3.bf16.msra.mxu0 %v2022_v25 }
  0xfe   : > { %1975 = vmatprep.subr.mxu0 %v2488_v1  ;;  %s2979_s21 = scalar_lea.hbm %s3141_s12, %s1885_s11 }
 0x100   : > { %1953 = vmatmul.mubr.msk.f32.vlgmr.msra.gmra.mrb[2].mxu0 %vm566_vm1, %v561_v28 }
 0x101   : > { %1977 = vmatprep.mubr.msk.f32.mxu0 %vm2487_vm0, %v2488_v1 }
 0x1cb   : > { %v2888_v16 = vpop.f32.mrb[0].mxu0 }
 0x1cc   : > { %799 = vrot.lane.b32.xlu1 %v2888_v16, %s2489_s16  ;;  %795 = vrot.lane.b32.xlu0 %v2888_v16, %s2490_s27  ;;  %v1932_v17 = vpop.f32.mrb[1].mxu0 }
 0x1cd   : > { %v713_v18 = vpop.f32.mrb[0].mxu1 }
 0x1ce   : > { %v1943_v19 = vpop.f32.mrb[1].mxu1  ;;  %1956 = vmatpush3.xpose.msk.msra.mxu1 %vm820_vm2, %v713_v18 }
 0x1cf   : > { %1960 = vmatprep.subr.mxu1 %v2488_v1 }
 0x1d0   : > { %818 = vrot.lane.b32.xlu1 %v2888_v16, %s2491_s22  ;;  %797 = vrot.lane.b32.xlu0 %v2888_v16, %s2492_s29 }
 0x1d3   : > { %v790_v42 = vpop.f32.mrb[2].mxu0 }
 0x1d4   : > { %802 = vrot.lane.b32.xlu0 %v713_v18, %s2490_s27  ;;  %v1954_v43 = vpop.f32.mrb[3].mxu0  ;;  %1976 = vmatpush3.msra.mxu0 %v790_v42 }
 0x1d5   : > { %1985 = vmatprep.subr.mxu0 %v2488_v1 }
 0x1d8   : > { %804 = vrot.lane.b32.xlu0 %v713_v18, %s2492_s29 }
 0x1dc   : > { %806 = vrot.lane.b32.xlu0 %v713_v18, %s2489_s16 }
 0x23e   : > { %v800_v26 = vpop.permute.xlu1 %799  ;;  %v796_v27 = vpop.permute.xlu0 %795 }
 0x23f   : > { %895 = vrot.lane.b32.xlu1 %v796_v27, %s2491_s22 }
 0x242   : > { %v819_v29 = vpop.permute.xlu1 %818  ;;  %v798_v30 = vpop.permute.xlu0 %797 }
 0x243   : > { %1958 = vmatmul.mubr.msk.f32.vlgmr.msra.gmra.mrb[2].mxu1 %vm820_vm2, %v819_v29  ;;  %971 = vrot.lane.b32.xlu1 %v798_v30, %s2491_s22 }
 0x244   : > { %1962 = vmatprep.mubr.msk.f32.mxu1 %vm2487_vm0, %v2488_v1 }
 0x246   : > { %v803_v31 = vpop.permute.xlu0 %802 }
 0x247   : > { %1047 = vrot.lane.b32.xlu1 %v800_v26, %s2491_s22  ;;  %1961 = vmatpush3.xpose.msk.msra.mxu1 %vm820_vm2, %v803_v31  ;;  %s2496_s22 = smov [#allocation15]  }
 0x248   : > { %1965 = vmatprep.subr.mxu1 %v2488_v1 }
 0x24a   : > { %v805_v32 = vpop.permute.xlu0 %804 }
 0x24e   : > { %v807_v35 = vpop.permute.xlu0 %806 }
 0x2b1   : > { %v896_v33 = vpop.permute.xlu1 %895 }
 0x2b2   : > { %1963 = vmatmul.mubr.msk.f32.vlgmr.msra.gmra.mrb[4].mxu1 %vm820_vm2, %v896_v33 }
 0x2b3   : > { %1966 = vmatpush3.xpose.msk.msra.mxu1 %vm820_vm2, %v805_v32  ;;  %1967 = vmatprep.mubr.msk.f32.mxu1 %vm2487_vm0, %v2488_v1 }
 0x2b4   : > { %1970 = vmatprep.subr.mxu1 %v2488_v1 }
 0x2b5   : > { %v972_v34 = vpop.permute.xlu1 %971 }
 0x2b6   : > { %1968 = vmatmul.mubr.msk.f32.vlgmr.msra.gmra.mrb[6].mxu1 %vm820_vm2, %v972_v34 }
 0x2b7   : > { %1971 = vmatpush3.xpose.msk.msra.mxu1 %vm820_vm2, %v807_v35  ;;  %1972 = vmatprep.mubr.msk.f32.mxu1 %vm2487_vm0, %v2488_v1 }
 0x2b8   : > { %1980 = vmatprep.subr.mxu1 %v2488_v1 }
 0x2b9   : > { %v1048_v36 = vpop.permute.xlu1 %1047 }
 0x2ba   : > { %1973 = vmatmul.mubr.msk.f32.vlgmr.msra.gmra.mrb[8].mxu1 %vm820_vm2, %v1048_v36 }
 0x2bb   : > { %1982 = vmatprep.mubr.msk.f32.mxu1 %vm2487_vm0, %v2488_v1 }
 0x316   : > { %v891_v39 = vpop.f32.mrb[2].mxu1 }
 0x317   : > { %v1125_v40 = vadd.f32 %v1124_v38, %v891_v39  ;;  %v1959_v41 = vpop.f32.mrb[3].mxu1 }
 0x319   : > { %v1129_v44 = vsel %vm820_vm2, %v1125_v40, -inf }
 0x31a   : > { %1130 = vmax.xlane.f32.xlu0 %v1129_v44 }
 0x385   : > { %v967_v45 = vpop.f32.mrb[4].mxu1 }
 0x386   : > { %v1126_v46 = vadd.f32 %v1124_v38, %v967_v45  ;;  %v1964_v47 = vpop.f32.mrb[5].mxu1  ;;  %v1498_v45 = vld [vmem:[#allocation13] sm:$0xff] }
 0x388   : > { %v1132_v48 = vsel %vm820_vm2, %v1126_v46, -inf }
 0x389   : > { %1133 = vmax.xlane.f32.xlu1 %v1132_v48  ;;  %v1043_v49 = vpop.f32.mrb[6].mxu1  ;;  %v1500_v48 = vld [vmem:[#allocation13 + $0x10] sm:$0xff] }
 0x38a   : > { %v1127_v50 = vadd.f32 %v1124_v38, %v1043_v49  ;;  %v1969_v51 = vpop.f32.mrb[7].mxu1  ;;  %v1501_v49 = vld [vmem:[#allocation13 + $0x18] sm:$0xff] }
 0x38c   : > { %v1135_v52 = vsel %vm820_vm2, %v1127_v50, -inf }
 0x38d   : > { %1136 = vmax.xlane.f32.xlu0 %v1135_v52  ;;  %v1119_v53 = vpop.f32.mrb[8].mxu1 }
 0x38e   : > { %v1128_v54 = vadd.f32 %v1124_v38, %v1119_v53  ;;  %v1974_v55 = vpop.f32.mrb[9].mxu1 }
 0x390   : > { %v1138_v56 = vsel %vm820_vm2, %v1128_v54, -inf }
 0x391   : > { %1139 = vmax.xlane.f32.xlu0 %v1138_v56 }
 0x39a   : > { %809 = vrot.lane.b32.xlu1 %v790_v42, %s2490_s27  ;;  %s2365_s27 = scalar_lea.vmem %s2981_s14, 512 }
 0x39b   : > { %p2366_p13 = scmp.ne.s32.totalorder %s2981_s14, %s2365_s27 }
 0x39d   : > { %p2367_p1 = pnand %p2366_p13, %p3142_p11 }
 0x39f   : > { %p2368_p6 = pneg %p2367_p1 }
 0x3a7   : > { %v1131_v57 = vpop.xlane.xlu0 %1130 }
 0x3a8   : > { %v1141_v58 = vsub.f32 %v1125_v40, %v1131_v57 }
 0x3aa   : > { %v1145_v59 = vmul.f32 1.442695, %v1141_v58 }
 0x3ac   : > { %2145 = vpow2.f32 %v1145_v59 }
 0x3b6   : > { %v2146_v60 = vpop.eup %2145 }
 0x3b7   : > { %v1153_v61 = vsel %vm820_vm2, %v2146_v60, 0.0 }
 0x3be   : > { %1154 = vadd.xlane.f32.xlu1 %v1153_v61 }
 0x416   : > { %v1134_v62 = vpop.xlane.xlu1 %1133 }
 0x417   : > { %v1142_v63 = vsub.f32 %v1126_v46, %v1134_v62  ;;  %v1499_v46 = vld [vmem:[#allocation13 + $0x8] sm:$0xff] }
 0x418   : > { %v2025_v47 = vpack.c.bf16 %v1499_v46, %v1498_v45 }
 0x419   : > { %v1147_v2 = vmul.f32 1.442695, %v1142_v63 }
 0x41a   : > { %v1137_v3 = vpop.xlane.xlu0 %1136  ;;  %v810_v4 = vpop.permute.xlu1 %809 }
 0x41b   : > { %2147 = vpow2.f32 %v1147_v2  ;;  %v1143_v5 = vsub.f32 %v1127_v50, %v1137_v3  ;;  %1981 = vmatpush3.msra.mxu1 %v810_v4  ;;  %v2028_v50 = vpack.c.bf16 %v1501_v49, %v1500_v48 }
 0x41c   : > { %1990 = vmatprep.subr.mxu1 %v2488_v1 }
 0x41d   : > { %v1149_v6 = vmul.f32 1.442695, %v1143_v5 }
 0x41e   : > { %v1140_v7 = vpop.xlane.xlu0 %1139 }
 0x41f   : > { %2149 = vpow2.f32 %v1149_v6  ;;  %v1144_v8 = vsub.f32 %v1128_v54, %v1140_v7 }
 0x421   : > { %v1151_v9 = vmul.f32 1.442695, %v1144_v8 }
 0x423   : > { %2151 = vpow2.f32 %v1151_v9 }
 0x425   : > { %v2148_v10 = vpop.eup %2147 }
 0x426   : > { %v1156_v11 = vsel %vm820_vm2, %v2148_v10, 0.0 }
 0x427   : > { %1157 = vadd.xlane.f32.xlu0 %v1156_v11 }
 0x429   : > { %v2150_v12 = vpop.eup %2149 }
 0x42a   : > { %v1159_v13 = vsel %vm820_vm2, %v2150_v12, 0.0 }
 0x42b   : > { %1160 = vadd.xlane.f32.xlu1 %v1159_v13 }
 0x42d   : > { %v2152_v14 = vpop.eup %2151 }
 0x42e   : > { %v1162_v15 = vsel %vm820_vm2, %v2152_v14, 0.0 }
 0x42f   : > { %1163 = vadd.xlane.f32.xlu0 %v1162_v15 }
 0x43c   : > { %815 = vrot.lane.b32.xlu1 %v790_v42, %s2489_s16  ;;  %s1612_s16 = scalar_lea.sflag [#allocation16], %s2842_s25 }
 0x445   : > { %812 = vrot.lane.b32.xlu0 %v790_v42, %s2492_s29  ;;  %s2369_s29 = sshll.u32 %s2496_s22, 4  ;;  %s2370_s29 = int_to_ptr.vmem [resolvable:$false] %s2369_s29 }
 0x446   : > { %s2371_s1 = scalar_lea.vmem %s2370_s29, 1024  ;;  %p2372_p5 = scmp.lt.s32.totalorder %s2981_s14, %s2370_s29 }
 0x447   : > { %p2373_p2 = scmp.lt.s32.totalorder %s2371_s1, %s2365_s27 }
 0x449   : > { %p2374_p4 = por %p2373_p2, %p2372_p5 }
 0x44b   : > { %v1155_v17 = vpop.xlane.xlu1 %1154  ;;  %p2375_p10 = pnand %p2374_p4, %p2368_p6 }
 0x44c   : > { %2153 = vrcp.f32 %v1155_v17 }
 0x456   : > { %v2154_v18 = vpop.eup %2153 }
 0x457   : > { %v1169_v19 = vmul.f32 %v2154_v18, %v1155_v17 }
 0x459   : > { %v1173_v20 = vsub.f32 2.0, %v1169_v19 }
 0x45b   : > { %v1177_v21 = vmul.f32 %v2154_v18, %v1173_v20 }
 0x45d   : > { %v1181_v22 = vmul.f32 %v2146_v60, %v1177_v21 }
 0x45f   : > { %1185 = vst.msk [vmem:[%s2946_s13] sm:$0xff] %vm820_vm2, %v1181_v22  ;;  %1978 = vmatmul.mubr.msk.f32.vlgmr.msra.gmra.mrb[4].mxu0 %vm820_vm2, %v1181_v22 }
 0x460   : > { %1987 = vmatprep.mubr.msk.f32.mxu0 %vm2487_vm0, %v2488_v1 }
 0x4b4   : > { %v1158_v23 = vpop.xlane.xlu0 %1157 }
 0x4b5   : > { %2155 = vrcp.f32 %v1158_v23 }
 0x4b8   : > { %v1161_v24 = vpop.xlane.xlu1 %1160 }
 0x4b9   : > { %2157 = vrcp.f32 %v1161_v24 }
 0x4bc   : > { %v1164_v25 = vpop.xlane.xlu0 %1163  ;;  %v816_v38 = vpop.permute.xlu1 %815 }
 0x4bd   : > { %2159 = vrcp.f32 %v1164_v25 }
 0x4bf   : > { %v2156_v26 = vpop.eup %2155 }
 0x4c0   : > { %v1170_v27 = vmul.f32 %v2156_v26, %v1158_v23  ;;  %v813_v28 = vpop.permute.xlu0 %812 }
 0x4c1   : > { %1986 = vmatpush3.msra.mxu0 %v813_v28 }
 0x4c2   : > { %v1174_v29 = vsub.f32 2.0, %v1170_v27  ;;  %2024 = vmatprep.subr.bf16.mxu0 %v2486_v0 }
 0x4c3   : > { %v2158_v30 = vpop.eup %2157 }
 0x4c4   : > { %v1178_v31 = vmul.f32 %v2156_v26, %v1174_v29  ;;  %v1171_v32 = vmul.f32 %v2158_v30, %v1161_v24 }
 0x4c6   : > { %v1182_v33 = vmul.f32 %v2148_v10, %v1178_v31  ;;  %v1175_v34 = vsub.f32 2.0, %v1171_v32 }
 0x4c7   : > { %v2160_v35 = vpop.eup %2159 }
 0x4c8   : > { %1186 = vst.msk [vmem:[%s2946_s13 + $0x8] sm:$0xff] %vm820_vm2, %v1182_v33  ;;  %v1179_v36 = vmul.f32 %v2158_v30, %v1175_v34  ;;  %v1172_v37 = vmul.f32 %v2160_v35, %v1164_v25  ;;  %1983 = vmatmul.mubr.msk.f32.vlgmr.msra.gmra.mrb[10].mxu1 %vm820_vm2, %v1182_v33 }
 0x4c9   : > { %1991 = vmatpush3.msra.mxu1 %v816_v38  ;;  %1992 = vmatprep.mubr.msk.f32.mxu1 %vm2487_vm0, %v2488_v1 }
 0x4ca   : > { %v1183_v39 = vmul.f32 %v2150_v12, %v1179_v36  ;;  %v1176_v40 = vsub.f32 2.0, %v1172_v37 }
 0x4cc   : > { %1187 = vst.msk [vmem:[%s2946_s13 + $0x10] sm:$0xff] %vm820_vm2, %v1183_v39  ;;  %v1180_v41 = vmul.f32 %v2160_v35, %v1176_v40  ;;  %1988 = vmatmul.mubr.msk.f32.vlgmr.msra.gmra.mrb[6].mxu0 %vm820_vm2, %v1183_v39 }
 0x4cd   : > { %2003 = vmatprep.mubr.msk.f32.mxu0 %vm2487_vm0, %v2488_v1  ;;  %2026 = vmatpush3.bf16.msra.mxu0 %v2025_v47 }
 0x4ce   : > { %v1184_v42 = vmul.f32 %v2152_v14, %v1180_v41  ;;  %2027 = vmatprep.subr.bf16.mxu0 %v2486_v0 }
 0x4d0   : > { %1188 = vst.msk [vmem:[%s2946_s13 + $0x18] sm:$0xff] %vm820_vm2, %v1184_v42  ;;  %1993 = vmatmul.mubr.msk.f32.vlgmr.msra.gmra.mrb[12].mxu1 %vm820_vm2, %v1184_v42 }
 0x4d1   : > { %2029 = vmatpush3.bf16.msra.mxu0 %v2028_v50 }
 0x532   : > { %v1258_v43 = vpop.f32.mrb[4].mxu0 }
 0x533   : > { %v1979_v44 = vpop.f32.mrb[5].mxu0 }
 0x59b   : > { %v1331_v51 = vpop.f32.mrb[10].mxu1 }
 0x59c   : > { %1482 = vrot.lane.b32.xlu1 %v1331_v51, %s2493_s9  ;;  %v1984_v1 = vpop.f32.mrb[11].mxu1 }
 0x59f   : > { %v1404_v52 = vpop.f32.mrb[6].mxu0 }
 0x5a0   : > { %1486 = vrot.lane.b32.xlu0 %v1404_v52, %s2494_s10  ;;  %v1989_v53 = vpop.f32.mrb[7].mxu0 }
 0x5a3   : > { %v1477_v54 = vpop.f32.mrb[12].mxu1 }
 0x5a4   : > { %1490 = vrot.lane.b32.xlu1 %v1477_v54, %s2495_s17  ;;  %v1994_v55 = vpop.f32.mrb[13].mxu1 }
 0x60e   : > { %v1483_v56 = vpop.permute.xlu1 %1482 }
 0x60f   : > { %v1493_v57 = vsel %vm820_vm2, %v1258_v43, %v1483_v56 }
 0x612   : > { %v1487_v0 = vpop.permute.xlu0 %1486 }
 0x613   : > { %v1495_v58 = vsel %vm1494_vm3, %v1493_v57, %v1487_v0 }
 0x616   : > { %v1491_v59 = vpop.permute.xlu1 %1490 }
 0x617   : > { %v1497_v60 = vsel %vm1496_vm4, %v1495_v58, %v1491_v59 }
 0x618   : > { %2004 = vmatmul.mubr.msk.f32.vlgmr.msra.gmra.mrb[8].mxu0 %vm566_vm1, %v1497_v60 }
 0x6eb   : > { %v1571_v61 = vpop.f32.mrb[8].mxu0 }
 0x6ec   : > { %v1572_v62 = vadd.f32 %v1571_v61, %v2888_v16  ;;  %v2005_v63 = vpop.f32.mrb[9].mxu0 }
 0x6ee   : > { %v1575_v2 = vsel %vm566_vm1, %v1572_v62, 0.0 }
 0x6ef   : > { %1576 = vadd.xlane.f32.xlu0 %v1575_v2 }
 0x77c   : > { %v1577_v3 = vpop.xlane.xlu0 %1576 }
 0x77d   : > { %v1579_v4 = vmul.f32 0.03125, %v1577_v3 }
 0x77f   : > { %v1580_v5 = vsub.f32 %v1572_v62, %v1579_v4 }
 0x781   : > { %v1581_v6 = vmul.f32 %v1580_v5, %v1580_v5 }
 0x783   : > { %v1582_v7 = vsel %vm566_vm1, %v1581_v6, 0.0 }
 0x784   : > { %1583 = vadd.xlane.f32.xlu1 %v1582_v7 }
 0x785   : > { %2378 = shalt.err (!%p2375_p10)
}
 0x786   : > { %s2379_s4 = scalar_lea.hbm %s2979_s21, 512  ;;  %s2383_s28 = scalar_lea.hbm %s3141_s12, 1024 }
 0x787   : > { %p2380_p3 = scmp.ne.s32.totalorder %s2979_s21, %s2379_s4  ;;  %p2384_p0 = scmp.lt.u32.totalorder %s2979_s21, %s3141_s12 }
 0x788   : > { %p2385_p7 = scmp.lt.u32.totalorder %s2383_s28, %s2379_s4  ;;  %p2387_p13 = scmp.lt.u32.totalorder %s2379_s4, %s2979_s21 }
 0x789   : > { %p2381_p8 = pnand %p2380_p3, %p3142_p11 }
 0x78a   : > { %p2386_p9 = por %p2385_p7, %p2384_p0 }
 0x78b   : > { %p2382_p12 = pneg %p2381_p8 }
 0x78c   : > { %p2388_p1 = por %p2387_p13, %p2386_p9 }
 0x78e   : > { %p2389_p6 = pnand %p2388_p1, %p2382_p12 }
 0x790   : > { %2392 = shalt.err (!%p2389_p6)
}
 0x791   : > { %s2497_s10 = smov 128   ;;  %s3143_s24 = sld [smem:[#allocation32_spill]] }
 0x792   : > { %2053 = dma.vmem_to_hbm [thread:$0]  (%p3142_p11), %s2981_s14, 512, %s2979_s21, %s1612_s16, %s2497_s10, %s2497_s10, %s2493_s9  }
 0x793   : > { %s3144_s22 = sld [smem:[#allocation33_spill]]  ;;  %s1880_s29 = sshll.u32 %s2580_s23, 7 }
 0x794   : > { %s547_s1 = scalar_lea.vmem [#allocation14], %s2845_s8  ;;  %s3145_s21 = sld [smem:[#allocation34_spill]] }
 0x795   : > { %s1625_s4 = sshll.u32 %s547_s1, 4  ;;  %s1607_s6 = scalar_lea.sflag [#allocation4], %s2842_s25  ;;  %s3021_s4 = int_to_ptr.vmem [resolvable:$true] %s1625_s4 }
 0x796   : > { %s2393_s26 = scalar_lea.vmem %s3021_s4, 128  ;;  %s2498_s23 = smov [#allocation14]  }
 0x797   : > { %v1876_v11 = vld [vmem:[%s3143_s24] ss:$0 sm:$0xff]  ;;  %p2394_p5 = scmp.ne.s32.totalorder %s3021_s4, %s2393_s26  ;;  %s2397_s8 = sshll.u32 %s2498_s23, 4  ;;  %s2398_s8 = int_to_ptr.vmem [resolvable:$false] %s2397_s8 }
 0x798   : > { %s2399_s28 = scalar_lea.vmem %s2398_s8, 256  ;;  %p2400_p10 = scmp.lt.s32.totalorder %s3021_s4, %s2398_s8 }
 0x799   : > { %v1877_v13 = vld [vmem:[%s3144_s22] ss:$0 sm:$0xff]  ;;  %p2395_p2 = pnand %p2394_p5, %p3142_p11  ;;  %p2401_p3 = scmp.lt.s32.totalorder %s2399_s28, %s2393_s26 }
 0x79a   : > { %s3019_s16 = scalar_lea.hbm %s3145_s21, %s1880_s29 }
 0x79b   : > { %p2396_p4 = pneg %p2395_p2  ;;  %p2402_p8 = por %p2401_p3, %p2400_p10 }
 0x79d   : > { %p2403_p12 = pnand %p2402_p8, %p2396_p4 }
 0x811   : > { %v1584_v16 = vpop.xlane.xlu1 %1583 }
 0x812   : > { %v1585_v8 = vmul.f32 0.03125, %v1584_v16 }
 0x814   : > { %v1586_v9 = vadd.f32 1e-05, %v1585_v8 }
 0x816   : > { %2161 = vrsqrt.f32 %v1586_v9 }
 0x820   : > { %v2162_v10 = vpop.eup %2161 }
 0x821   : > { %v1588_v12 = vmul.f32 %v2162_v10, %v1580_v5 }
 0x823   : > { %v1596_v14 = vmul.f32 %v1876_v11, %v1588_v12 }
 0x825   : > { %v1604_v15 = vadd.f32 %v1877_v13, %v1596_v14 }
 0x827   : > { %1605 = vst.msk [vmem:[%s547_s1] sm:$0xff] %vm566_vm1, %v1604_v15 }
 0x828   : > { %2406 = shalt.err (!%p2403_p12)
}
 0x829   : > { %s2407_s25 = scalar_lea.hbm %s3019_s16, 128  ;;  %s2411_s10 = scalar_lea.hbm %s3145_s21, 256 }
 0x82a   : > { %p2408_p0 = scmp.ne.s32.totalorder %s3019_s16, %s2407_s25  ;;  %p2412_p13 = scmp.lt.u32.totalorder %s3019_s16, %s3145_s21 }
 0x82b   : > { %p2413_p1 = scmp.lt.u32.totalorder %s2411_s10, %s2407_s25  ;;  %p2415_p5 = scmp.lt.u32.totalorder %s2407_s25, %s3019_s16 }
 0x82c   : > { %p2409_p7 = pnand %p2408_p0, %p3142_p11 }
 0x82d   : > { %p2414_p6 = por %p2413_p1, %p2412_p13 }
 0x82e   : > { %p2410_p9 = pneg %p2409_p7 }
 0x82f   : > { %p2416_p2 = por %p2415_p5, %p2414_p6 }
 0x831   : > { %p2417_p4 = pnand %p2416_p2, %p2410_p9 }
 0x833   : > { %2420 = shalt.err (!%p2417_p4)
}
 0x834   : > { %2052 = dma.vmem_to_hbm [thread:$0]  (%p3142_p11), %s3021_s4, 128, %s3019_s16, %s1607_s6  }
 0x835 PF: > { %s3146_s24 = sld [smem:[#allocation23_spill]]  ;;  %s3147_s30 = sld [smem:[#allocation28_spill]] }
 0x836   : > { %s3148_s27 = sld [smem:[#allocation24_spill]] }
 0x83b   : > { %s1653_s22 = sand.u32 1, %s3146_s24   ;;  %p3149_p10 = scmp.ne.s32.totalorder %s3147_s30, 0 }
 0x83c   : > { %p3150_p3 = scmp.ge.s32.totalorder %s3148_s27, 2  ;;  %s1654_s29 = scalar_lea.sflag [#allocation4], %s1653_s22 }
 0x83e   : > { %p2080_p8 = pnand %p3150_p3, %p3149_p10 }
 0x840   : > { %2454 = dma.done.wait (!%p2080_p8), %s1654_s29, 128  }
 0x841   : > { %2456 = vsyncadd (!%p2080_p8), %s1654_s29, 4294967168  ;;  %s1663_s1 = scalar_lea.sflag [#allocation16], %s1653_s22 }
 0x842   : > { %2458 = dma.done.wait (!%p2080_p8), %s1663_s1, 512  }
 0x843   : > { %2460 = vsyncadd (!%p2080_p8), %s1663_s1, 4294966784  ;;  %s3151_s20 = sld [smem:[#allocation25_spill]]  ;;  %s3152_s15 = sld [smem:[#allocation26_spill]] }
 0x844   : > { %s3153_s17 = smov %s2467_s18  ;;  %s3154_s18 = smov %s2471_s19 }
 0x849   : > { %p33_p11 = scmp.ge.s32.totalorder %s3151_s20, 4   ;;  %s3155_s19 = smov %s3152_s15 }
 0x84b   :  { %35 = sbr.rel (!%p33_p11) target bundleno = 19 (0x13), region = 165 }
 0x852   :  { %1668 = vsyncpa [#allocation3], 1 }
 0x853   :  { %1670 = vsyncpa [#allocation3 + $0x1], 1 }
 0x854   :  { %1671 = vsyncpa [#allocation6], 1 }
 0x855   :  { %1673 = vsyncpa [#allocation6 + $0x1], 1 }
 0x856   :  { %1674 = vsyncpa [#allocation9], 1 }
 0x857   :  { %1675 = vsyncpa [#allocation12], 1 }
 0x858   :  { %1676 = vsyncpa [#allocation4], 1 }
 0x859   :  { %1678 = vsyncpa [#allocation4 + $0x1], 1 }
 0x85a   :  { %1679 = vsyncpa [#allocation16], 1 }
 0x85b   :  { %1681 = vsyncpa [#allocation16 + $0x1], 1 }

</bundles_post_ra>
